<compile_context>
chip_gen: v7x
topology: tpu7x:2x2x1
jax: 0.10.0
libtpu: 0.0.40
codegen_flags: <defaults>
</compile_context>

<pallas_src>
import math

import jax
import jax.numpy as jnp
from jax.experimental import pallas as pl
from jax.experimental.pallas import tpu as pltpu


# ---------------------------------------------------------------------------
# helpers
# ---------------------------------------------------------------------------
def _round_up(x: int, m: int) -> int:
    return (x + m - 1) // m * m


_VMEM_LIMIT = 48 * 1024 * 1024  # leaves headroom on v5e/v6e (128 MiB) and v7x (64 MiB)


# ---------------------------------------------------------------------------
# Tiled matmul: out = a @ b  (a:(M,K), b:(K,N)), f32 accumulation on the MXU.
# ---------------------------------------------------------------------------
def _matmul_kernel_acc(a_ref, b_ref, o_ref, acc_ref):
    @pl.when(pl.program_id(2) == 0)
    def _init():
        acc_ref[...] = jnp.zeros_like(acc_ref)

    acc_ref[...] += jnp.dot(a_ref[...], b_ref[...],
                            preferred_element_type=jnp.float32)

    @pl.when(pl.program_id(2) == pl.num_programs(2) - 1)
    def _store():
        o_ref[...] = acc_ref[...].astype(o_ref.dtype)


def _matmul_kernel_single(a_ref, b_ref, o_ref):
    # Single K step: write straight to the output, no f32 scratch round-trip.
    o_ref[...] = jnp.dot(a_ref[...], b_ref[...],
                         preferred_element_type=jnp.float32).astype(o_ref.dtype)


def pallas_matmul(a, b, out_dtype=None, *, tm=512, tn=None, tk=None):
    """a: (M, K), b: (K, N) -> (M, N). Pads to (8,128)-aligned tiles."""
    M, K = a.shape
    K2, N = b.shape
    assert K == K2
    out_dtype = out_dtype or a.dtype

    # Weight-stationary defaults (perf feedback): keep the whole RHS (weight)
    # VMEM-resident whenever it fits so it is DMA'd once per call and the
    # kernel streams only A.
    if tn is None:
        tn = min(_round_up(N, 128), 1024)
    if tk is None:
        tk = min(_round_up(K, 128), 2048)
    tm = min(tm, _round_up(M, 8))
    tn = min(tn, _round_up(N, 128))
    tk = min(tk, _round_up(K, 128))
    Mp, Kp, Np = _round_up(M, tm), _round_up(K, tk), _round_up(N, tn)

    if (Mp, Kp) != (M, K):
        a = jnp.pad(a, ((0, Mp - M), (0, Kp - K)))
    if (Kp, Np) != (K, N):
        b = jnp.pad(b, ((0, Kp - K), (0, Np - N)))

    grid = (Mp // tm, Np // tn, Kp // tk)
    single_k = grid[2] == 1
    kernel = _matmul_kernel_single if single_k else _matmul_kernel_acc
    scratch = [] if single_k else [pltpu.VMEM((tm, tn), jnp.float32)]

    cost = pl.CostEstimate(
        flops=int(2 * Mp * Np * Kp),
        transcendentals=0,
        bytes_accessed=int(a.size * a.dtype.itemsize + b.size * b.dtype.itemsize
                           + Mp * Np * jnp.dtype(out_dtype).itemsize),
    )

    out = pl.pallas_call(
        kernel,
        out_shape=jax.ShapeDtypeStruct((Mp, Np), out_dtype),
        grid_spec=pltpu.PrefetchScalarGridSpec(
            num_scalar_prefetch=0,
            grid=grid,
            in_specs=[
                pl.BlockSpec((tm, tk), lambda i, j, k: (i, k)),
                pl.BlockSpec((tk, tn), lambda i, j, k: (k, j)),
            ],
            out_specs=pl.BlockSpec((tm, tn), lambda i, j, k: (i, j)),
            scratch_shapes=scratch,
        ),
        compiler_params=pltpu.CompilerParams(
            dimension_semantics=("parallel", "parallel", "arbitrary"),
            vmem_limit_bytes=_VMEM_LIMIT,
        ),
        cost_estimate=cost,
    )(a, b)
    if (Mp, Np) != (M, N):
        out = out[:M, :N]
    return out


# ---------------------------------------------------------------------------
# Flash attention (online softmax, in-kernel causal mask, GQA head folding).
# ---------------------------------------------------------------------------
def flash_attention(q, k, v, *, start_pos, n_rep, scale,
                    tq=None, tk=512, bf16_exp=False):
    """Causal flash attention over a KV cache.

    q : (B, Sq, H*hd)   queries in their native layout; query i is at absolute
                        position start_pos + i.
    k, v : (B, Hkv, T, hd)  full KV cache (keys at absolute positions 0..T-1).
    Returns (B, Sq, H*hd) in q.dtype.
    """
    B, Sq, QD = q.shape
    _, Hkv, T, hd = k.shape
    H = Hkv * n_rep
    assert QD == H * hd
    # TODO(synk): head_dim not a multiple of 128 needs an unfolded/padded variant.
    assert hd % 128 == 0, "head_dim must be a multiple of 128"

    # Tile sizes: large KV tiles, folded rows R = n_rep * tq capped at 512.
    if tq is None:
        tq = max(8, 512 // n_rep)
    tq = min(tq, _round_up(Sq, 8))
    tk = min(tk, _round_up(T, 128))
    Sqp, Tp = _round_up(Sq, tq), _round_up(T, tk)
    R = n_rep * tq            # folded query rows per grid step
    gdim = n_rep * hd         # query columns per KV group

    if Sqp != Sq:
        q = jnp.pad(q, ((0, 0), (0, Sqp - Sq), (0, 0)))
    if Tp != T:
        k = jnp.pad(k, ((0, 0), (0, 0), (0, Tp - T), (0, 0)))
        v = jnp.pad(v, ((0, 0), (0, 0), (0, Tp - T), (0, 0)))

    kv_len = T                # number of real (unpadded) keys

    def kernel(q_ref, k_ref, v_ref, o_ref, qf_sc, m_sc, l_sc, acc_sc):
        qi = pl.program_id(2)
        ki = pl.program_id(3)

        @pl.when(ki == 0)
        def _init():
            m_sc[...] = jnp.full_like(m_sc, -1e30)
            l_sc[...] = jnp.zeros_like(l_sc)
            acc_sc[...] = jnp.zeros_like(acc_sc)
            qs = q_ref[...]                                    # (tq, n_rep*hd)
            if n_rep > 1:
                # Fold the n_rep query heads of this KV group into MXU rows.
                qf_sc[...] = jnp.concatenate(
                    [qs[:, r * hd:(r + 1) * hd] for r in range(n_rep)], axis=0)
            else:
                qf_sc[...] = qs

        # Skip KV blocks that are entirely masked (causal) or entirely padding.
        block_visible = jnp.logical_and(
            ki * tk < start_pos + (qi + 1) * tq,   # causal visibility
            ki * tk < kv_len)                      # block holds real keys

        @pl.when(block_visible)
        def _compute():
            s = jax.lax.dot_general(
                qf_sc[...], k_ref[...],
                dimension_numbers=(((1,), (1,)), ((), ())),
                preferred_element_type=jnp.float32) * scale     # (R, tk)

            # Causal + KV-padding mask generated in-kernel (no HBM streaming).
            q_pos = (start_pos + qi * tq
                     + jax.lax.broadcasted_iota(jnp.int32, (tq, tk), 0))
            k_pos = ki * tk + jax.lax.broadcasted_iota(jnp.int32, (tq, tk), 1)
            bias2d = jnp.where(
                jnp.logical_and(k_pos <= q_pos, k_pos < kv_len),
                jnp.float32(0.0), jnp.float32(-1e30))
            bias = (jnp.concatenate([bias2d] * n_rep, axis=0)
                    if n_rep > 1 else bias2d)
            s = s + bias

            m_prev = m_sc[...]
            m_new = jnp.maximum(m_prev, s.max(axis=-1, keepdims=True))
            alpha = jnp.exp(m_prev - m_new)
            if bf16_exp:
                # v6e/v7x: bf16 EUP ~doubles exp throughput (keep f32 on v5e).
                p = jnp.exp((s - m_new).astype(jnp.bfloat16))
                l_sc[...] = alpha * l_sc[...] + p.astype(jnp.float32).sum(
                    axis=-1, keepdims=True)
            else:
                p = jnp.exp(s - m_new)
                l_sc[...] = alpha * l_sc[...] + p.sum(axis=-1, keepdims=True)
            acc_sc[...] = alpha * acc_sc[...] + jnp.dot(
                p.astype(v_ref.dtype), v_ref[...],
                preferred_element_type=jnp.float32)
            m_sc[...] = m_new

        @pl.when(ki == pl.num_programs(3) - 1)
        def _finalize():
            l = jnp.maximum(l_sc[...], 1e-30)     # guard fully-masked rows
            o = acc_sc[...] * pl.reciprocal(l, approx=True)     # (R, hd)
            if n_rep > 1:                         # unfold rows -> head columns
                o = jnp.concatenate(
                    [o[r * tq:(r + 1) * tq, :] for r in range(n_rep)], axis=1)
            o_ref[...] = o.astype(o_ref.dtype)

    grid = (B, Hkv, Sqp // tq, Tp // tk)

    cost = pl.CostEstimate(
        flops=int(4 * B * H * Sqp * Tp * hd),
        transcendentals=int(B * H * Sqp * Tp),
        bytes_accessed=int(q.size * q.dtype.itemsize
                           + (Sqp // tq) * (k.size + v.size) * k.dtype.itemsize
                           + B * Sqp * QD * q.dtype.itemsize),
    )

    out = pl.pallas_call(
        kernel,
        out_shape=jax.ShapeDtypeStruct((B, Sqp, QD), q.dtype),
        grid_spec=pltpu.PrefetchScalarGridSpec(
            num_scalar_prefetch=0,
            grid=grid,
            in_specs=[
                pl.BlockSpec((None, tq, gdim), lambda b, h, qi, ki: (b, qi, h)),
                pl.BlockSpec((None, None, tk, hd),
                             lambda b, h, qi, ki: (b, h, ki, 0)),
                pl.BlockSpec((None, None, tk, hd),
                             lambda b, h, qi, ki: (b, h, ki, 0)),
            ],
            out_specs=pl.BlockSpec((None, tq, gdim),
                                   lambda b, h, qi, ki: (b, qi, h)),
            scratch_shapes=[
                pltpu.VMEM((R, hd), q.dtype),       # folded q (computed once / qi)
                pltpu.VMEM((R, 1), jnp.float32),    # running max m
                pltpu.VMEM((R, 1), jnp.float32),    # running denominator l
                pltpu.VMEM((R, hd), jnp.float32),   # output accumulator
            ],
        ),
        compiler_params=pltpu.CompilerParams(
            dimension_semantics=("parallel", "parallel", "parallel", "arbitrary"),
            vmem_limit_bytes=_VMEM_LIMIT,
        ),
        cost_estimate=cost,
    )(q, k, v)
    if Sqp != Sq:
        out = out[:, :Sq, :]
    return out


# ---------------------------------------------------------------------------
# Rotary embedding (matches torch.view_as_complex interleaved-pair convention).
# TODO(synk): could be fused as a Pallas epilogue of the QKV projection; kept
#             as cheap elementwise JAX glue (negligible vs matmul/attention).
# ---------------------------------------------------------------------------
def _apply_rope(x, cos, sin):
    # x: (B, S, H, hd); cos/sin: (S, hd//2)
    B, S, H, hd = x.shape
    xf = x.astype(jnp.float32).reshape(B, S, H, hd // 2, 2)
    xr, xi = xf[..., 0], xf[..., 1]
    c = cos.reshape(1, S, 1, hd // 2)
    s = sin.reshape(1, S, 1, hd // 2)
    out_r = xr * c - xi * s
    out_i = xr * s + xi * c
    return jnp.stack([out_r, out_i], axis=-1).reshape(B, S, H, hd)


# ---------------------------------------------------------------------------
# One-time weight preparation (hoisted out of the per-call path, per feedback).
# ---------------------------------------------------------------------------
def prepare_attention_weights(wq, wk, wv, wo, dtype=jnp.bfloat16):
    """Fuse QKV weights and pre-transpose/cast both projections once at init."""
    w_qkv_t = jnp.concatenate([wq, wk, wv], axis=0).T.astype(dtype)  # (dim, q+2kv)
    wo_t = jnp.asarray(wo).T.astype(dtype)                            # (H*hd, dim)
    return w_qkv_t, wo_t


# ---------------------------------------------------------------------------
# Full Attention.forward
# ---------------------------------------------------------------------------
def attention_forward(x, start_pos, freqs_cos, freqs_sin, w_qkv_t, wo_t,
                      past_key_value=None, *, n_heads, n_kv_heads=None,
                      compute_dtype=jnp.bfloat16, bf16_exp=False):
    """x: (B, S, dim); w_qkv_t: (dim, (H+2*Hkv)*hd); wo_t: (H*hd, dim).
    The LLaMA causal mask is generated inside the flash kernel from start_pos.
    TODO(synk): arbitrary non-causal additive masks would need a streamed-mask
                kernel variant.
    Returns (output (B,S,dim) in x.dtype, (keys, values) cache (B,Hkv,T,hd))."""
    n_kv_heads = n_heads if n_kv_heads is None else n_kv_heads
    n_rep = n_heads // n_kv_heads
    B, S, D = x.shape
    hd = D // n_heads
    q_dim = n_heads * hd
    kv_dim = n_kv_heads * hd
    out_dtype = x.dtype

    # Fused QKV projection (weight already concatenated/transposed/cast).
    qkv = pallas_matmul(x.astype(compute_dtype).reshape(B * S, D), w_qkv_t,
                        out_dtype=compute_dtype)
    q = qkv[:, :q_dim].reshape(B, S, n_heads, hd)
    k = qkv[:, q_dim:q_dim + kv_dim].reshape(B, S, n_kv_heads, hd)
    v = qkv[:, q_dim + kv_dim:].reshape(B, S, n_kv_heads, hd)

    # Rotary embedding (f32 math, cast back like torch's .type_as).
    q = _apply_rope(q, freqs_cos, freqs_sin).astype(compute_dtype)
    k = _apply_rope(k, freqs_cos, freqs_sin).astype(compute_dtype)

    # KV cache in the PyTorch layout (B, Hkv, T, hd): only the *new* k/v are
    # transposed (small); the cache is consumed in place by the flash kernel.
    k = k.transpose(0, 2, 1, 3)
    v = v.transpose(0, 2, 1, 3)
    if past_key_value is not None:
        pk, pv = past_key_value
        k = jnp.concatenate([pk.astype(compute_dtype), k], axis=2)
        v = jnp.concatenate([pv.astype(compute_dtype), v], axis=2)
    new_past = (k, v)

    # Flash attention: q and the attention output stay in the native
    # (B, S, H*hd) layout (free reshapes, no HBM transposes); GQA folding and
    # the causal mask live inside the kernel.
    attn = flash_attention(q.reshape(B, S, q_dim), k, v,
                           start_pos=start_pos, n_rep=n_rep,
                           scale=1.0 / math.sqrt(hd), bf16_exp=bf16_exp)

    # Output projection.
    out = pallas_matmul(attn.reshape(B * S, q_dim), wo_t, out_dtype=jnp.float32)
    return out.reshape(B, S, D).astype(out_dtype), new_past


# ---------------------------------------------------------------------------
# Demo + pure-JAX reference check
# ---------------------------------------------------------------------------
if __name__ == "__main__":
    B, S, dim = 2, 8, 512
    n_heads, n_kv_heads = 4, 2
    hd = dim // n_heads           # 128
    past_len = 8
    start_pos = past_len
    total = past_len + S
    n_rep = n_heads // n_kv_heads

    key = jax.random.PRNGKey(0)
    ks = jax.random.split(key, 7)
    x = jax.random.normal(ks[0], (B, S, dim), jnp.float32)
    wq = jax.random.normal(ks[1], (n_heads * hd, dim), jnp.float32) * 0.02
    wk = jax.random.normal(ks[2], (n_kv_heads * hd, dim), jnp.float32) * 0.02
    wv = jax.random.normal(ks[3], (n_kv_heads * hd, dim), jnp.float32) * 0.02
    wo = jax.random.normal(ks[4], (dim, n_heads * hd), jnp.float32) * 0.02
    past_k = jax.random.normal(ks[5], (B, n_kv_heads, past_len, hd), jnp.float32) * 0.3
    past_v = jax.random.normal(ks[6], (B, n_kv_heads, past_len, hd), jnp.float32) * 0.3

    # Rotary frequencies for positions [start_pos, start_pos + S)  (theta=10000).
    inv_freq = 1.0 / (10000.0 ** (jnp.arange(0, hd, 2, dtype=jnp.float32) / hd))
    pos = jnp.arange(start_pos, start_pos + S, dtype=jnp.float32)
    angles = pos[:, None] * inv_freq[None, :]          # (S, hd//2)
    f_cos, f_sin = jnp.cos(angles), jnp.sin(angles)

    # One-time weight preparation (hoisted out of the per-call path).
    w_qkv_t, wo_t = prepare_attention_weights(wq, wk, wv, wo, jnp.bfloat16)

    out, (new_k, new_v) = attention_forward(
        x, start_pos, f_cos, f_sin, w_qkv_t, wo_t,
        past_key_value=(past_k, past_v),
        n_heads=n_heads, n_kv_heads=n_kv_heads,
        compute_dtype=jnp.bfloat16,
        bf16_exp=False)   # set True on v6e/v7x (bf16 EUP); keep False on v5e
    out = jax.block_until_ready(out)

    # ---- pure-JAX f32 reference of the PyTorch forward (bf16-rounded inputs) ----
    def bf(t):
        return t.astype(jnp.bfloat16).astype(jnp.float32)

    xb, wqb, wkb, wvb, wob = bf(x), bf(wq), bf(wk), bf(wv), bf(wo)
    pkb, pvb = bf(past_k), bf(past_v)

    q_r = (xb @ wqb.T).reshape(B, S, n_heads, hd)
    k_r = (xb @ wkb.T).reshape(B, S, n_kv_heads, hd)
    v_r = (xb @ wvb.T).reshape(B, S, n_kv_heads, hd)
    q_r = _apply_rope(q_r, f_cos, f_sin)
    k_r = _apply_rope(k_r, f_cos, f_sin)
    q_r = q_r.transpose(0, 2, 1, 3)
    k_r = jnp.concatenate([pkb, k_r.transpose(0, 2, 1, 3)], axis=2)
    v_r = jnp.concatenate([pvb, v_r.transpose(0, 2, 1, 3)], axis=2)
    k_rep = jnp.repeat(k_r, n_rep, axis=1)             # repeat_interleave semantics
    v_rep = jnp.repeat(v_r, n_rep, axis=1)

    # Causal mask the LLaMA Transformer would build for these positions.
    q_pos = start_pos + jnp.arange(S)[:, None]
    k_pos = jnp.arange(total)[None, :]
    mask = jnp.where(k_pos <= q_pos, 0.0, -jnp.inf).astype(jnp.float32)

    scores = jnp.einsum("bhqd,bhkd->bhqk", q_r, k_rep) / math.sqrt(hd)
    scores = scores + mask[None, None]
    probs = jax.nn.softmax(scores, axis=-1)
    ctx = jnp.einsum("bhqk,bhkd->bhqd", probs, v_rep)
    ref = ctx.transpose(0, 2, 1, 3).reshape(B, S, n_heads * hd) @ wob.T

    assert out.shape == (B, S, dim)
    assert new_k.shape == (B, n_kv_heads, total, hd)
    assert new_v.shape == (B, n_kv_heads, total, hd)
    err = float(jnp.max(jnp.abs(out.astype(jnp.float32) - ref)))
    assert jnp.allclose(out.astype(jnp.float32), ref, atol=2e-2, rtol=2e-2), err
    cache_err = float(jnp.max(jnp.abs(new_k.astype(jnp.float32) - k_r)))
    assert jnp.allclose(new_k.astype(jnp.float32), k_r, atol=2e-2, rtol=2e-2), cache_err

    print("KERNEL_OK")
</pallas_src>

<mosaic_0001>
module attributes {stable_mosaic.version = 11 : i64} {
  func.func @_matmul_kernel_single(%arg0: i32, %arg1: i32, %arg2: i32, %arg3: memref<16x512xbf16, #tpu.memory_space<vmem>>, %arg4: memref<512x1024xbf16, #tpu.memory_space<vmem>>, %arg5: memref<16x1024xbf16, #tpu.memory_space<vmem>>) attributes {dimension_semantics = [#tpu.dimension_semantics<parallel>, #tpu.dimension_semantics<parallel>, #tpu.dimension_semantics<arbitrary>], iteration_bounds = array<i64: 1, 1, 1>, scalar_prefetch = 0 : i64, scratch_operands = 0 : i64, tpu.core_type = #tpu.core_type<tc>, window_params = [{transform_indices = @transform_0, window_bounds = array<i64: 16, 512>}, {transform_indices = @transform_1, window_bounds = array<i64: 512, 1024>}, {transform_indices = @transform_2, window_bounds = array<i64: 16, 1024>}]} {
    %c0 = arith.constant 0 : index
    %c0_0 = arith.constant 0 : index
    %0 = vector.load %arg3[%c0, %c0_0] : memref<16x512xbf16, #tpu.memory_space<vmem>>, vector<16x512xbf16>
    %c0_1 = arith.constant 0 : index
    %c0_2 = arith.constant 0 : index
    %1 = vector.load %arg4[%c0_1, %c0_2] : memref<512x1024xbf16, #tpu.memory_space<vmem>>, vector<512x1024xbf16>
    %cst = arith.constant dense<0.000000e+00> : vector<16x1024xf32>
    %2 = tpu.matmul %0, %1, %cst {dimension_numbers = #tpu.dot_dimension_numbers<[1], [0], [0], [1], [0, 0, 1, 1], [], []>} : vector<16x512xbf16>, vector<512x1024xbf16>, vector<16x1024xf32> -> vector<16x1024xf32>
    %3 = arith.truncf %2 : vector<16x1024xf32> to vector<16x1024xbf16>
    %c0_3 = arith.constant 0 : index
    %c0_4 = arith.constant 0 : index
    %4 = vector.load %arg5[%c0_3, %c0_4] : memref<16x1024xbf16, #tpu.memory_space<vmem>>, vector<16x1024xbf16>
    tpu.vector_store %arg5[%c0_3, %c0_4], %3 {strides = array<i32>} : memref<16x1024xbf16, #tpu.memory_space<vmem>>, vector<16x1024xbf16>,
    return
  }
  func.func @transform_0(%arg0: i32, %arg1: i32, %arg2: i32) -> (i32, i32) {
    %c0_i32 = arith.constant 0 : i32
    return %arg0, %arg2 : i32, i32
  }
  func.func @transform_1(%arg0: i32, %arg1: i32, %arg2: i32) -> (i32, i32) {
    %c0_i32 = arith.constant 0 : i32
    return %arg2, %arg1 : i32, i32
  }
  func.func @transform_2(%arg0: i32, %arg1: i32, %arg2: i32) -> (i32, i32) {
    %c0_i32 = arith.constant 0 : i32
    return %arg0, %arg1 : i32, i32
  }
}

</mosaic_0001>

<bundles_post_ra>
// kernel: tpu_custom_call.1
= control target key start
LH: loop header
LB: loop body
LE: loop exit
PB: predicated region body
PF: predicated region fallthrough
CT: control target
= control target key end

     0   :  { %7 = vsyncpa [#allocation3], 0  ;;  %s2483_s0 = inlined_call_operand.hbm [shape: bf16[16,512], index: 0, kind: input, shape index: {}]   ;;  %s2484_s1 = inlined_call_operand.hbm [shape: bf16[512,1024], index: 1, kind: input, shape index: {}]   ;;  %s2485_s2 = inlined_call_operand.hbm [shape: bf16[16,1024], index: 2, kind: output, shape index: {}]  }
   0x1   :  { %8 = vsyncpa [#allocation6], 0 }
   0x2   :  { %9 = vsyncpa [#allocation4], 0  ;;  %s2395_s9 = smov [#allocation2]   ;;  %s2323_s13 = scalar_lea.hbm %s2483_s0, 512 }
   0x3   :  { %s15_s10 = sshll.u32 %s2395_s9, 4  ;;  %p2324_p0 = scmp.ne.s32.totalorder %s2483_s0, %s2323_s13  ;;  %s16_s10 = int_to_ptr.vmem [resolvable:$true] %s15_s10 }
   0x4   :  { %p2327_p1 = scmp.lt.u32.totalorder %s2323_s13, %s2483_s0 }
   0x6   :  { %p2329_p2 = pnand %p2327_p1, %p2324_p0 }
   0x8   :  { %2332 = shalt.err (!%p2329_p2)
}
   0x9   :  { %s2333_s18 = scalar_lea.vmem %s16_s10, 512  ;;  %p2338_p4 = scmp.lt.s32.totalorder %s16_s10, %s16_s10 }
   0xa   :  { %p2334_p3 = scmp.ne.s32.totalorder %s16_s10, %s2333_s18  ;;  %p2339_p5 = scmp.lt.s32.totalorder %s2333_s18, %s2333_s18 }
   0xc   :  { %p2340_p6 = por %p2339_p5, %p2338_p4 }
   0xe   :  { %p2341_p7 = pnand %p2340_p6, %p2334_p3 }
  0x10   :  { %2344 = shalt.err (!%p2341_p7)
}
  0x11   :  { %s2396_s19 = smov 256   ;;  %s2397_s20 = smov 16  }
  0x12   :  { %21 = dma.hbm_to_vmem [thread:$0]  %s2483_s0, 512, %s16_s10, [#allocation3], %s2396_s19, %s2396_s19, %s2397_s20  }
  0x13   :  { %s2398_s23 = smov [#allocation5]   ;;  %s2345_s27 = scalar_lea.hbm %s2484_s1, 32768 }
  0x14   :  { %s27_s24 = sshll.u32 %s2398_s23, 4  ;;  %p2346_p8 = scmp.ne.s32.totalorder %s2484_s1, %s2345_s27  ;;  %s28_s24 = int_to_ptr.vmem [resolvable:$true] %s27_s24 }
  0x15   :  { %p2349_p9 = scmp.lt.u32.totalorder %s2345_s27, %s2484_s1 }
  0x17   :  { %p2351_p10 = pnand %p2349_p9, %p2346_p8 }
  0x19   :  { %2354 = shalt.err (!%p2351_p10)
}
  0x1a   :  { %s2355_s4 = scalar_lea.vmem %s28_s24, 32768  ;;  %p2360_p12 = scmp.lt.s32.totalorder %s28_s24, %s28_s24 }
  0x1b   :  { %p2356_p11 = scmp.ne.s32.totalorder %s28_s24, %s2355_s4  ;;  %p2361_p13 = scmp.lt.s32.totalorder %s2355_s4, %s2355_s4 }
  0x1d   :  { %p2362_p0 = por %p2361_p13, %p2360_p12 }
  0x1f   :  { %p2363_p1 = pnand %p2362_p0, %p2356_p11 }
  0x21   :  { %2366 = shalt.err (!%p2363_p1)
}
  0x22   :  { %s2399_s0 = smov 512   ;;  %s2400_s5 = smov 32  }
  0x23   :  { %33 = dma.hbm_to_vmem [thread:$0]  %s2484_s1, 32768, %s28_s24, [#allocation6], %s2399_s0, %s2399_s0, %s2400_s5  }
  0x24   :  { %2389 = dma.done.wait [#allocation3], 512  }
  0x25   :  { %2390 = vsyncadd [#allocation3], 4294966784 }
  0x26   :  { %2391 = dma.done.wait [#allocation6], 32768  }
  0x27   :  { %2392 = vsyncadd [#allocation6], 4294934528  ;;  %v44_v0 = vld [vmem:[#allocation5] sm:$0xff]  ;;  %v45_v2 = vld [vmem:[#allocation5 + $0x8] sm:$0xff]  ;;  %s2401_s1 = smov [#allocation7]  }
  0x28   :  { %v48_v1 = vld [vmem:[#allocation5 + $0x20] sm:$0xff]  ;;  %v49_v4 = vld [vmem:[#allocation5 + $0x28] sm:$0xff]  ;;  %s2005_s8 = sshll.u32 %s2401_s1, 4  ;;  %s2006_s8 = int_to_ptr.vmem [resolvable:$true] %s2005_s8 }
  0x29   :  { %v2023_v3 = vcombine.high %v44_v0, %v48_v1  ;;  %v2022_v5 = vcombine.low %v44_v0, %v48_v1  ;;  %v52_v6 = vld [vmem:[#allocation5 + $0x40] sm:$0xff]  ;;  %v2025_v8 = vcombine.high %v45_v2, %v49_v4  ;;  %v2024_v9 = vcombine.low %v45_v2, %v49_v4  ;;  %v53_v11 = vld [vmem:[#allocation5 + $0x48] sm:$0xff]  ;;  %s2367_s9 = scalar_lea.vmem %s2006_s8, 1024  ;;  %p2372_p3 = scmp.lt.s32.totalorder %s2006_s8, %s2006_s8 }
  0x2a   :  { %v56_v7 = vld [vmem:[#allocation5 + $0x60] sm:$0xff]  ;;  %v57_v12 = vld [vmem:[#allocation5 + $0x68] sm:$0xff]  ;;  %p2368_p2 = scmp.ne.s32.totalorder %s2006_s8, %s2367_s9  ;;  %p2373_p4 = scmp.lt.s32.totalorder %s2367_s9, %s2367_s9 }
  0x2b   :  { %v2031_v10 = vcombine.high %v52_v6, %v56_v7  ;;  %v60_v13 = vld [vmem:[#allocation5 + $0x80] sm:$0xff]  ;;  %1600 = vmatprep.subr.bf16.mxu0 %v2023_v3  ;;  %v2033_v14 = vcombine.high %v53_v11, %v57_v12  ;;  %v61_v16 = vld [vmem:[#allocation5 + $0x88] sm:$0xff]  ;;  %1686 = vmatprep.subr.bf16.mxu1 %v2025_v8  ;;  %v2030_v18 = vcombine.low %v52_v6, %v56_v7 }
  0x2c   :  { %v64_v15 = vld [vmem:[#allocation5 + $0xa0] sm:$0xff]  ;;  %v65_v17 = vld [vmem:[#allocation5 + $0xa8] sm:$0xff]  ;;  %1601 = vmatpush1.bf16.msra.mxu0 %v2022_v5  ;;  %1687 = vmatpush1.bf16.msra.mxu1 %v2024_v9  ;;  %v2032_v19 = vcombine.low %v53_v11, %v57_v12  ;;  %p2374_p5 = por %p2373_p4, %p2372_p3 }
  0x2d   :  { %1602 = vmatprep.subr.bf16.mxu0 %v2031_v10  ;;  %v2039_v20 = vcombine.high %v60_v13, %v64_v15  ;;  %1688 = vmatprep.subr.bf16.mxu1 %v2033_v14  ;;  %v2041_v21 = vcombine.high %v61_v16, %v65_v17  ;;  %v68_v22 = vld [vmem:[#allocation5 + $0xc0] sm:$0xff]  ;;  %v69_v24 = vld [vmem:[#allocation5 + $0xc8] sm:$0xff]  ;;  %v2038_v26 = vcombine.low %v60_v13, %v64_v15 }
  0x2e   :  { %v72_v23 = vld [vmem:[#allocation5 + $0xe0] sm:$0xff]  ;;  %v73_v25 = vld [vmem:[#allocation5 + $0xe8] sm:$0xff]  ;;  %v2040_v27 = vcombine.low %v61_v16, %v65_v17  ;;  %p2375_p6 = pnand %p2374_p5, %p2368_p2 }
  0x2f   :  { %v2047_v28 = vcombine.high %v68_v22, %v72_v23  ;;  %v2049_v29 = vcombine.high %v69_v24, %v73_v25  ;;  %v76_v30 = vld [vmem:[#allocation5 + $0x100] sm:$0xff]  ;;  %v77_v32 = vld [vmem:[#allocation5 + $0x108] sm:$0xff]  ;;  %v2046_v34 = vcombine.low %v68_v22, %v72_v23  ;;  %v2048_v35 = vcombine.low %v69_v24, %v73_v25 }
  0x30   :  { %1603 = vmatpush1.bf16.msra.mxu0 %v2030_v18  ;;  %1689 = vmatpush1.bf16.msra.mxu1 %v2032_v19  ;;  %v80_v31 = vld [vmem:[#allocation5 + $0x120] sm:$0xff]  ;;  %v81_v33 = vld [vmem:[#allocation5 + $0x128] sm:$0xff] }
  0x31   :  { %1604 = vmatprep.subr.bf16.mxu0 %v2039_v20  ;;  %1690 = vmatprep.subr.bf16.mxu1 %v2041_v21  ;;  %v2055_v36 = vcombine.high %v76_v30, %v80_v31  ;;  %v2057_v37 = vcombine.high %v77_v32, %v81_v33  ;;  %v84_v38 = vld [vmem:[#allocation5 + $0x140] sm:$0xff]  ;;  %v85_v40 = vld [vmem:[#allocation5 + $0x148] sm:$0xff]  ;;  %v2054_v42 = vcombine.low %v76_v30, %v80_v31 }
  0x32   :  { %v88_v39 = vld [vmem:[#allocation5 + $0x160] sm:$0xff]  ;;  %v89_v41 = vld [vmem:[#allocation5 + $0x168] sm:$0xff]  ;;  %v2056_v43 = vcombine.low %v77_v32, %v81_v33 }
  0x33   :  { %v2063_v44 = vcombine.high %v84_v38, %v88_v39  ;;  %v2065_v45 = vcombine.high %v85_v40, %v89_v41  ;;  %v92_v46 = vld [vmem:[#allocation5 + $0x180] sm:$0xff]  ;;  %v93_v48 = vld [vmem:[#allocation5 + $0x188] sm:$0xff]  ;;  %v2062_v50 = vcombine.low %v84_v38, %v88_v39  ;;  %v2064_v51 = vcombine.low %v85_v40, %v89_v41 }
  0x34   :  { %1605 = vmatpush1.bf16.msra.mxu0 %v2038_v26  ;;  %1691 = vmatpush1.bf16.msra.mxu1 %v2040_v27  ;;  %v96_v47 = vld [vmem:[#allocation5 + $0x1a0] sm:$0xff]  ;;  %v97_v49 = vld [vmem:[#allocation5 + $0x1a8] sm:$0xff] }
  0x35   :  { %1606 = vmatprep.subr.bf16.mxu0 %v2047_v28  ;;  %1692 = vmatprep.subr.bf16.mxu1 %v2049_v29  ;;  %v2071_v52 = vcombine.high %v92_v46, %v96_v47  ;;  %v2073_v53 = vcombine.high %v93_v48, %v97_v49  ;;  %v100_v54 = vld [vmem:[#allocation5 + $0x1c0] sm:$0xff]  ;;  %v101_v57 = vld [vmem:[#allocation5 + $0x1c8] sm:$0xff]  ;;  %v2070_v59 = vcombine.low %v92_v46, %v96_v47 }
  0x36   :  { %v104_v55 = vld [vmem:[#allocation5 + $0x1e0] sm:$0xff]  ;;  %v105_v58 = vld [vmem:[#allocation5 + $0x1e8] sm:$0xff]  ;;  %v2072_v60 = vcombine.low %v93_v48, %v97_v49 }
  0x37   :  { %v2444_v56 = vld [vmem:[#allocation2 + $0x4] ss:$16 sps:$4 sm:$0xff]   ;;  %v2079_v61 = vcombine.high %v100_v54, %v104_v55  ;;  %v2081_v62 = vcombine.high %v101_v57, %v105_v58  ;;  %v109_v1 = vld [vmem:[#allocation5 + $0x208] sm:$0xff]  ;;  %v2078_v3 = vcombine.low %v100_v54, %v104_v55  ;;  %v2080_v4 = vcombine.low %v101_v57, %v105_v58 }
  0x38   :  { %1607 = vmatpush1.bf16.msra.mxu0 %v2046_v34  ;;  %1693 = vmatpush1.bf16.msra.mxu1 %v2048_v35  ;;  %v108_v63 = vld [vmem:[#allocation5 + $0x200] sm:$0xff]  ;;  %v113_v2 = vld [vmem:[#allocation5 + $0x228] sm:$0xff] }
  0x39   :  { %1608 = vmatprep.subr.bf16.mxu0 %v2055_v36  ;;  %1694 = vmatprep.subr.bf16.mxu1 %v2057_v37  ;;  %v112_v0 = vld [vmem:[#allocation5 + $0x220] sm:$0xff]  ;;  %v2089_v6 = vcombine.high %v109_v1, %v113_v2  ;;  %v117_v9 = vld [vmem:[#allocation5 + $0x248] sm:$0xff]  ;;  %v2088_v12 = vcombine.low %v109_v1, %v113_v2 }
  0x3a   :  { %1632 = vmatprep.mubr.bf16.mxu0 %v2444_v56  ;;  %1718 = vmatprep.mubr.bf16.mxu1 %v2444_v56  ;;  %v2087_v5 = vcombine.high %v108_v63, %v112_v0  ;;  %v116_v7 = vld [vmem:[#allocation5 + $0x240] sm:$0xff]  ;;  %v121_v10 = vld [vmem:[#allocation5 + $0x268] sm:$0xff]  ;;  %v2086_v11 = vcombine.low %v108_v63, %v112_v0 }
  0x3b   :  { %v120_v8 = vld [vmem:[#allocation5 + $0x260] sm:$0xff]  ;;  %v2097_v14 = vcombine.high %v117_v9, %v121_v10  ;;  %v125_v17 = vld [vmem:[#allocation5 + $0x288] sm:$0xff]  ;;  %v2096_v20 = vcombine.low %v117_v9, %v121_v10 }
  0x3c   :  { %1609 = vmatpush1.bf16.msra.mxu0 %v2054_v42  ;;  %1695 = vmatpush1.bf16.msra.mxu1 %v2056_v43  ;;  %v2095_v13 = vcombine.high %v116_v7, %v120_v8  ;;  %v124_v15 = vld [vmem:[#allocation5 + $0x280] sm:$0xff]  ;;  %v129_v18 = vld [vmem:[#allocation5 + $0x2a8] sm:$0xff]  ;;  %v2094_v19 = vcombine.low %v116_v7, %v120_v8 }
  0x3d   :  { %1610 = vmatprep.subr.bf16.mxu0 %v2063_v44  ;;  %1696 = vmatprep.subr.bf16.mxu1 %v2065_v45  ;;  %v128_v16 = vld [vmem:[#allocation5 + $0x2a0] sm:$0xff]  ;;  %v2105_v22 = vcombine.high %v125_v17, %v129_v18  ;;  %v133_v25 = vld [vmem:[#allocation5 + $0x2c8] sm:$0xff]  ;;  %v2104_v28 = vcombine.low %v125_v17, %v129_v18 }
  0x3e   :  { %v2103_v21 = vcombine.high %v124_v15, %v128_v16  ;;  %v132_v23 = vld [vmem:[#allocation5 + $0x2c0] sm:$0xff]  ;;  %v137_v26 = vld [vmem:[#allocation5 + $0x2e8] sm:$0xff]  ;;  %v2102_v27 = vcombine.low %v124_v15, %v128_v16 }
  0x3f   :  { %v136_v24 = vld [vmem:[#allocation5 + $0x2e0] sm:$0xff]  ;;  %v2113_v30 = vcombine.high %v133_v25, %v137_v26  ;;  %v141_v33 = vld [vmem:[#allocation5 + $0x308] sm:$0xff]  ;;  %v2112_v36 = vcombine.low %v133_v25, %v137_v26 }
  0x40   :  { %1611 = vmatpush1.bf16.msra.mxu0 %v2062_v50  ;;  %1697 = vmatpush1.bf16.msra.mxu1 %v2064_v51  ;;  %v2111_v29 = vcombine.high %v132_v23, %v136_v24  ;;  %v140_v31 = vld [vmem:[#allocation5 + $0x300] sm:$0xff]  ;;  %v145_v34 = vld [vmem:[#allocation5 + $0x328] sm:$0xff]  ;;  %v2110_v35 = vcombine.low %v132_v23, %v136_v24 }
  0x41   :  { %1612 = vmatprep.subr.bf16.mxu0 %v2071_v52  ;;  %1698 = vmatprep.subr.bf16.mxu1 %v2073_v53  ;;  %v144_v32 = vld [vmem:[#allocation5 + $0x320] sm:$0xff]  ;;  %v2121_v38 = vcombine.high %v141_v33, %v145_v34  ;;  %v149_v41 = vld [vmem:[#allocation5 + $0x348] sm:$0xff]  ;;  %v2120_v44 = vcombine.low %v141_v33, %v145_v34 }
  0x42   :  { %v2119_v37 = vcombine.high %v140_v31, %v144_v32  ;;  %v148_v39 = vld [vmem:[#allocation5 + $0x340] sm:$0xff]  ;;  %v153_v42 = vld [vmem:[#allocation5 + $0x368] sm:$0xff]  ;;  %v2118_v43 = vcombine.low %v140_v31, %v144_v32 }
  0x43   :  { %v152_v40 = vld [vmem:[#allocation5 + $0x360] sm:$0xff]  ;;  %v2129_v46 = vcombine.high %v149_v41, %v153_v42  ;;  %v157_v49 = vld [vmem:[#allocation5 + $0x388] sm:$0xff]  ;;  %v2128_v52 = vcombine.low %v149_v41, %v153_v42 }
  0x44   :  { %1613 = vmatpush1.bf16.msra.mxu0 %v2070_v59  ;;  %1699 = vmatpush1.bf16.msra.mxu1 %v2072_v60  ;;  %v2127_v45 = vcombine.high %v148_v39, %v152_v40  ;;  %v156_v47 = vld [vmem:[#allocation5 + $0x380] sm:$0xff]  ;;  %v161_v50 = vld [vmem:[#allocation5 + $0x3a8] sm:$0xff]  ;;  %v2126_v51 = vcombine.low %v148_v39, %v152_v40 }
  0x45   :  { %1614 = vmatprep.subr.bf16.mxu0 %v2079_v61  ;;  %1700 = vmatprep.subr.bf16.mxu1 %v2081_v62  ;;  %v160_v48 = vld [vmem:[#allocation5 + $0x3a0] sm:$0xff]  ;;  %v2137_v54 = vcombine.high %v157_v49, %v161_v50  ;;  %v165_v58 = vld [vmem:[#allocation5 + $0x3c8] sm:$0xff]  ;;  %v2136_v61 = vcombine.low %v157_v49, %v161_v50 }
  0x46   :  { %v2135_v53 = vcombine.high %v156_v47, %v160_v48  ;;  %v164_v55 = vld [vmem:[#allocation5 + $0x3c0] sm:$0xff]  ;;  %v169_v59 = vld [vmem:[#allocation5 + $0x3e8] sm:$0xff]  ;;  %v2134_v60 = vcombine.low %v156_v47, %v160_v48 }
  0x47   :  { %v168_v57 = vld [vmem:[#allocation5 + $0x3e0] sm:$0xff]  ;;  %v2145_v63 = vcombine.high %v165_v58, %v169_v59  ;;  %v173_v2 = vld [vmem:[#allocation5 + $0x408] sm:$0xff] }
  0x48   :  { %1615 = vmatpush1.bf16.msra.mxu0 %v2078_v3  ;;  %1701 = vmatpush1.bf16.msra.mxu1 %v2080_v4  ;;  %v2143_v62 = vcombine.high %v164_v55, %v168_v57  ;;  %v172_v0 = vld [vmem:[#allocation5 + $0x400] sm:$0xff]  ;;  %v177_v3 = vld [vmem:[#allocation5 + $0x428] sm:$0xff]  ;;  %v2142_v4 = vcombine.low %v164_v55, %v168_v57 }
  0x49   :  { %1616 = vmatprep.subr.bf16.mxu0 %v2087_v5  ;;  %1702 = vmatprep.subr.bf16.mxu1 %v2089_v6  ;;  %v176_v1 = vld [vmem:[#allocation5 + $0x420] sm:$0xff]  ;;  %v2144_v5 = vcombine.low %v165_v58, %v169_v59  ;;  %v2153_v7 = vcombine.high %v173_v2, %v177_v3 }
  0x4a   :  { %v2151_v6 = vcombine.high %v172_v0, %v176_v1  ;;  %v180_v8 = vld [vmem:[#allocation5 + $0x440] sm:$0xff] }
  0x4b   :  { %v184_v9 = vld [vmem:[#allocation5 + $0x460] sm:$0xff] }
  0x4c   :  { %1617 = vmatpush1.bf16.msra.mxu0 %v2086_v11  ;;  %1703 = vmatpush1.bf16.msra.mxu1 %v2088_v12  ;;  %v2448_v10 = vld [vmem:[#allocation2] ss:$16 sps:$4 sm:$0xff]   ;;  %v181_v11 = vld [vmem:[#allocation5 + $0x448] sm:$0xff]  ;;  %v2159_v15 = vcombine.high %v180_v8, %v184_v9 }
  0x4d   :  { %1618 = vmatprep.subr.bf16.mxu0 %v2095_v13  ;;  %1704 = vmatprep.subr.bf16.mxu1 %v2097_v14  ;;  %v185_v12 = vld [vmem:[#allocation5 + $0x468] sm:$0xff]  ;;  %v2150_v13 = vcombine.low %v172_v0, %v176_v1  ;;  %v2152_v14 = vcombine.low %v173_v2, %v177_v3  ;;  %v188_v17 = vld [vmem:[#allocation5 + $0x480] sm:$0xff] }
  0x4e   :  { %v2161_v16 = vcombine.high %v181_v11, %v185_v12  ;;  %v192_v18 = vld [vmem:[#allocation5 + $0x4a0] sm:$0xff]  ;;  %v2160_v23 = vcombine.low %v181_v11, %v185_v12 }
  0x4f   :  { %v2167_v24 = vcombine.high %v188_v17, %v192_v18  ;;  %v196_v26 = vld [vmem:[#allocation5 + $0x4c0] sm:$0xff] }
  0x50   :  { %1619 = vmatpush1.bf16.msra.mxu0 %v2094_v19  ;;  %1705 = vmatpush1.bf16.msra.mxu1 %v2096_v20  ;;  %v2450_v19 = vld [vmem:[#allocation2 + $0xc] ss:$16 sps:$4 sm:$0xff]   ;;  %v204_v34 = vld [vmem:[#allocation5 + $0x500] sm:$0xff] }
  0x51   :  { %1620 = vmatprep.subr.bf16.mxu0 %v2103_v21  ;;  %1706 = vmatprep.subr.bf16.mxu1 %v2105_v22  ;;  %v189_v20 = vld [vmem:[#allocation5 + $0x488] sm:$0xff]  ;;  %v2158_v22 = vcombine.low %v180_v8, %v184_v9  ;;  %v212_v42 = vld [vmem:[#allocation5 + $0x540] sm:$0xff] }
  0x52   :  { %v193_v21 = vld [vmem:[#allocation5 + $0x4a8] sm:$0xff]  ;;  %v220_v50 = vld [vmem:[#allocation5 + $0x580] sm:$0xff] }
  0x53   :  { %v2169_v25 = vcombine.high %v189_v20, %v193_v21  ;;  %v2168_v31 = vcombine.low %v189_v20, %v193_v21  ;;  %v228_v59 = vld [vmem:[#allocation5 + $0x5c0] sm:$0xff] }
  0x54   :  { %1621 = vmatpush1.bf16.msra.mxu0 %v2102_v27  ;;  %1707 = vmatpush1.bf16.msra.mxu1 %v2104_v28  ;;  %v200_v27 = vld [vmem:[#allocation5 + $0x4e0] sm:$0xff]  ;;  %v197_v28 = vld [vmem:[#allocation5 + $0x4c8] sm:$0xff] }
  0x55   :  { %1622 = vmatprep.subr.bf16.mxu0 %v2111_v29  ;;  %1708 = vmatprep.subr.bf16.mxu1 %v2113_v30  ;;  %v201_v29 = vld [vmem:[#allocation5 + $0x4e8] sm:$0xff]  ;;  %v2166_v30 = vcombine.low %v188_v17, %v192_v18  ;;  %v2175_v32 = vcombine.high %v196_v26, %v200_v27  ;;  %v236_v3 = vld [vmem:[#allocation5 + $0x600] sm:$0xff] }
  0x56   :  { %v2177_v33 = vcombine.high %v197_v28, %v201_v29  ;;  %v2176_v39 = vcombine.low %v197_v28, %v201_v29  ;;  %v244_v12 = vld [vmem:[#allocation5 + $0x640] sm:$0xff] }
  0x57   :  { %v252_v21 = vld [vmem:[#allocation5 + $0x680] sm:$0xff] }
  0x58   :  { %1623 = vmatpush1.bf16.msra.mxu0 %v2110_v35  ;;  %1709 = vmatpush1.bf16.msra.mxu1 %v2112_v36  ;;  %v208_v35 = vld [vmem:[#allocation5 + $0x520] sm:$0xff]  ;;  %v205_v36 = vld [vmem:[#allocation5 + $0x508] sm:$0xff] }
  0x59   :  { %1624 = vmatprep.subr.bf16.mxu0 %v2119_v37  ;;  %1710 = vmatprep.subr.bf16.mxu1 %v2121_v38  ;;  %v209_v37 = vld [vmem:[#allocation5 + $0x528] sm:$0xff]  ;;  %v2174_v38 = vcombine.low %v196_v26, %v200_v27  ;;  %v2183_v40 = vcombine.high %v204_v34, %v208_v35  ;;  %v260_v29 = vld [vmem:[#allocation5 + $0x6c0] sm:$0xff] }
  0x5a   :  { %v2185_v41 = vcombine.high %v205_v36, %v209_v37  ;;  %v2184_v47 = vcombine.low %v205_v36, %v209_v37  ;;  %v268_v37 = vld [vmem:[#allocation5 + $0x700] sm:$0xff] }
  0x5c   :  { %1625 = vmatpush1.bf16.msra.mxu0 %v2118_v43  ;;  %1711 = vmatpush1.bf16.msra.mxu1 %v2120_v44  ;;  %v216_v43 = vld [vmem:[#allocation5 + $0x560] sm:$0xff]  ;;  %v213_v44 = vld [vmem:[#allocation5 + $0x548] sm:$0xff] }
  0x5d   :  { %1626 = vmatprep.subr.bf16.mxu0 %v2127_v45  ;;  %1712 = vmatprep.subr.bf16.mxu1 %v2129_v46  ;;  %v217_v45 = vld [vmem:[#allocation5 + $0x568] sm:$0xff]  ;;  %v2182_v46 = vcombine.low %v204_v34, %v208_v35  ;;  %v2191_v48 = vcombine.high %v212_v42, %v216_v43 }
  0x5e   :  { %v2193_v49 = vcombine.high %v213_v44, %v217_v45  ;;  %v2192_v55 = vcombine.low %v213_v44, %v217_v45  ;;  %v276_v45 = vld [vmem:[#allocation5 + $0x740] sm:$0xff] }
  0x60   :  { %1627 = vmatpush1.bf16.msra.mxu0 %v2126_v51  ;;  %1713 = vmatpush1.bf16.msra.mxu1 %v2128_v52  ;;  %v224_v51 = vld [vmem:[#allocation5 + $0x5a0] sm:$0xff]  ;;  %v221_v52 = vld [vmem:[#allocation5 + $0x588] sm:$0xff] }
  0x61   :  { %1628 = vmatprep.subr.bf16.mxu0 %v2135_v53  ;;  %1714 = vmatprep.subr.bf16.mxu1 %v2137_v54  ;;  %v225_v53 = vld [vmem:[#allocation5 + $0x5a8] sm:$0xff]  ;;  %v2190_v54 = vcombine.low %v212_v42, %v216_v43  ;;  %v2199_v57 = vcombine.high %v220_v50, %v224_v51 }
  0x62   :  { %v2201_v58 = vcombine.high %v221_v52, %v225_v53  ;;  %v2200_v0 = vcombine.low %v221_v52, %v225_v53  ;;  %v284_v53 = vld [vmem:[#allocation5 + $0x780] sm:$0xff] }
  0x64   :  { %1629 = vmatpush1.bf16.msra.mxu0 %v2134_v60  ;;  %1715 = vmatpush1.bf16.msra.mxu1 %v2136_v61  ;;  %v232_v60 = vld [vmem:[#allocation5 + $0x5e0] sm:$0xff]  ;;  %v229_v61 = vld [vmem:[#allocation5 + $0x5c8] sm:$0xff] }
  0x65   :  { %1630 = vmatprep.subr.bf16.mxu0 %v2143_v62  ;;  %1716 = vmatprep.subr.bf16.mxu1 %v2145_v63  ;;  %v233_v62 = vld [vmem:[#allocation5 + $0x5e8] sm:$0xff]  ;;  %v2198_v63 = vcombine.low %v220_v50, %v224_v51  ;;  %v2207_v1 = vcombine.high %v228_v59, %v232_v60 }
  0x66   :  { %v2209_v2 = vcombine.high %v229_v61, %v233_v62  ;;  %v2208_v8 = vcombine.low %v229_v61, %v233_v62  ;;  %v292_v62 = vld [vmem:[#allocation5 + $0x7c0] sm:$0xff] }
  0x68   :  { %1631 = vmatpush1.bf16.msra.mxu0 %v2142_v4  ;;  %1717 = vmatpush1.bf16.msra.mxu1 %v2144_v5  ;;  %v240_v4 = vld [vmem:[#allocation5 + $0x620] sm:$0xff]  ;;  %v237_v5 = vld [vmem:[#allocation5 + $0x608] sm:$0xff] }
  0x69   :  { %1643 = vmatprep.subr.bf16.mxu0 %v2151_v6  ;;  %1729 = vmatprep.subr.bf16.mxu1 %v2153_v7  ;;  %v241_v6 = vld [vmem:[#allocation5 + $0x628] sm:$0xff]  ;;  %v2206_v7 = vcombine.low %v228_v59, %v232_v60  ;;  %v2215_v9 = vcombine.high %v236_v3, %v240_v4 }
  0x6a   :  { %v2217_v11 = vcombine.high %v237_v5, %v241_v6  ;;  %v2216_v17 = vcombine.low %v237_v5, %v241_v6  ;;  %v46_v6 = vld [vmem:[#allocation5 + $0x10] sm:$0xff] }
  0x6b   :  { %1633 = vmatmul.mubr.bf16.vlgmr.msra.gmra.mrb[0].mxu0 %v2448_v10  ;;  %1719 = vmatmul.mubr.bf16.vlgmr.msra.gmra.mrb[0].mxu1 %v2448_v10 }
  0x6c   :  { %1644 = vmatpush1.bf16.msra.mxu0 %v2150_v13  ;;  %1730 = vmatpush1.bf16.msra.mxu1 %v2152_v14  ;;  %v248_v13 = vld [vmem:[#allocation5 + $0x660] sm:$0xff]  ;;  %v245_v14 = vld [vmem:[#allocation5 + $0x648] sm:$0xff] }
  0x6d   :  { %1645 = vmatprep.subr.bf16.mxu0 %v2159_v15  ;;  %1731 = vmatprep.subr.bf16.mxu1 %v2161_v16  ;;  %v249_v15 = vld [vmem:[#allocation5 + $0x668] sm:$0xff]  ;;  %v2214_v16 = vcombine.low %v236_v3, %v240_v4  ;;  %v2223_v18 = vcombine.high %v244_v12, %v248_v13 }
  0x6e   :  { %1675 = vmatprep.mubr.bf16.mxu0 %v2450_v19  ;;  %1761 = vmatprep.mubr.bf16.mxu1 %v2450_v19  ;;  %v2225_v20 = vcombine.high %v245_v14, %v249_v15  ;;  %v2224_v26 = vcombine.low %v245_v14, %v249_v15  ;;  %v54_v15 = vld [vmem:[#allocation5 + $0x50] sm:$0xff] }
  0x70   :  { %1646 = vmatpush1.bf16.msra.mxu0 %v2158_v22  ;;  %1732 = vmatpush1.bf16.msra.mxu1 %v2160_v23  ;;  %v256_v22 = vld [vmem:[#allocation5 + $0x6a0] sm:$0xff]  ;;  %v253_v23 = vld [vmem:[#allocation5 + $0x688] sm:$0xff] }
  0x71   :  { %1647 = vmatprep.subr.bf16.mxu0 %v2167_v24  ;;  %1733 = vmatprep.subr.bf16.mxu1 %v2169_v25  ;;  %v257_v24 = vld [vmem:[#allocation5 + $0x6a8] sm:$0xff]  ;;  %v2222_v25 = vcombine.low %v244_v12, %v248_v13  ;;  %v2231_v27 = vcombine.high %v252_v21, %v256_v22 }
  0x72   :  { %v2233_v28 = vcombine.high %v253_v23, %v257_v24  ;;  %v2232_v34 = vcombine.low %v253_v23, %v257_v24 }
  0x74   :  { %1648 = vmatpush1.bf16.msra.mxu0 %v2166_v30  ;;  %1734 = vmatpush1.bf16.msra.mxu1 %v2168_v31  ;;  %v264_v30 = vld [vmem:[#allocation5 + $0x6e0] sm:$0xff]  ;;  %v261_v31 = vld [vmem:[#allocation5 + $0x6c8] sm:$0xff] }
  0x75   :  { %1649 = vmatprep.subr.bf16.mxu0 %v2175_v32  ;;  %1735 = vmatprep.subr.bf16.mxu1 %v2177_v33  ;;  %v265_v32 = vld [vmem:[#allocation5 + $0x6e8] sm:$0xff]  ;;  %v2230_v33 = vcombine.low %v252_v21, %v256_v22  ;;  %v2239_v35 = vcombine.high %v260_v29, %v264_v30 }
  0x76   :  { %v2241_v36 = vcombine.high %v261_v31, %v265_v32  ;;  %v2240_v42 = vcombine.low %v261_v31, %v265_v32 }
  0x78   :  { %1650 = vmatpush1.bf16.msra.mxu0 %v2174_v38  ;;  %1736 = vmatpush1.bf16.msra.mxu1 %v2176_v39  ;;  %v272_v38 = vld [vmem:[#allocation5 + $0x720] sm:$0xff]  ;;  %v269_v39 = vld [vmem:[#allocation5 + $0x708] sm:$0xff] }
  0x79   :  { %1651 = vmatprep.subr.bf16.mxu0 %v2183_v40  ;;  %1737 = vmatprep.subr.bf16.mxu1 %v2185_v41  ;;  %v273_v40 = vld [vmem:[#allocation5 + $0x728] sm:$0xff]  ;;  %v2238_v41 = vcombine.low %v260_v29, %v264_v30  ;;  %v2247_v43 = vcombine.high %v268_v37, %v272_v38 }
  0x7a   :  { %v2249_v44 = vcombine.high %v269_v39, %v273_v40  ;;  %v2248_v50 = vcombine.low %v269_v39, %v273_v40 }
  0x7c   :  { %1652 = vmatpush1.bf16.msra.mxu0 %v2182_v46  ;;  %1738 = vmatpush1.bf16.msra.mxu1 %v2184_v47  ;;  %v280_v46 = vld [vmem:[#allocation5 + $0x760] sm:$0xff]  ;;  %v277_v47 = vld [vmem:[#allocation5 + $0x748] sm:$0xff] }
  0x7d   :  { %1653 = vmatprep.subr.bf16.mxu0 %v2191_v48  ;;  %1739 = vmatprep.subr.bf16.mxu1 %v2193_v49  ;;  %v281_v48 = vld [vmem:[#allocation5 + $0x768] sm:$0xff]  ;;  %v2246_v49 = vcombine.low %v268_v37, %v272_v38  ;;  %v2255_v51 = vcombine.high %v276_v45, %v280_v46 }
  0x7e   :  { %v2257_v52 = vcombine.high %v277_v47, %v281_v48  ;;  %v2256_v59 = vcombine.low %v277_v47, %v281_v48  ;;  %v86_v48 = vld [vmem:[#allocation5 + $0x150] sm:$0xff] }
  0x80   :  { %1654 = vmatpush1.bf16.msra.mxu0 %v2190_v54  ;;  %1740 = vmatpush1.bf16.msra.mxu1 %v2192_v55  ;;  %v288_v54 = vld [vmem:[#allocation5 + $0x7a0] sm:$0xff]  ;;  %v285_v55 = vld [vmem:[#allocation5 + $0x788] sm:$0xff] }
  0x81   :  { %1655 = vmatprep.subr.bf16.mxu0 %v2199_v57  ;;  %1741 = vmatprep.subr.bf16.mxu1 %v2201_v58  ;;  %v289_v57 = vld [vmem:[#allocation5 + $0x7a8] sm:$0xff]  ;;  %v2254_v58 = vcombine.low %v276_v45, %v280_v46  ;;  %v2263_v60 = vcombine.high %v284_v53, %v288_v54 }
  0x82   :  { %v2265_v61 = vcombine.high %v285_v55, %v289_v57  ;;  %v2264_v3 = vcombine.low %v285_v55, %v289_v57  ;;  %v94_v57 = vld [vmem:[#allocation5 + $0x190] sm:$0xff] }
  0x84   :  { %1656 = vmatpush1.bf16.msra.mxu0 %v2198_v63  ;;  %1742 = vmatpush1.bf16.msra.mxu1 %v2200_v0  ;;  %v296_v63 = vld [vmem:[#allocation5 + $0x7e0] sm:$0xff]  ;;  %v293_v0 = vld [vmem:[#allocation5 + $0x7c8] sm:$0xff] }
  0x85   :  { %1657 = vmatprep.subr.bf16.mxu0 %v2207_v1  ;;  %1743 = vmatprep.subr.bf16.mxu1 %v2209_v2  ;;  %v297_v1 = vld [vmem:[#allocation5 + $0x7e8] sm:$0xff]  ;;  %v2262_v2 = vcombine.low %v284_v53, %v288_v54  ;;  %v2271_v4 = vcombine.high %v292_v62, %v296_v63 }
  0x86   :  { %v2273_v5 = vcombine.high %v293_v0, %v297_v1  ;;  %v2272_v12 = vcombine.low %v293_v0, %v297_v1  ;;  %v102_v1 = vld [vmem:[#allocation5 + $0x1d0] sm:$0xff] }
  0x88   :  { %1658 = vmatpush1.bf16.msra.mxu0 %v2206_v7  ;;  %1744 = vmatpush1.bf16.msra.mxu1 %v2208_v8  ;;  %v50_v7 = vld [vmem:[#allocation5 + $0x30] sm:$0xff]  ;;  %v47_v8 = vld [vmem:[#allocation5 + $0x18] sm:$0xff] }
  0x89   :  { %1659 = vmatprep.subr.bf16.mxu0 %v2215_v9  ;;  %1745 = vmatprep.subr.bf16.mxu1 %v2217_v11  ;;  %v51_v9 = vld [vmem:[#allocation5 + $0x38] sm:$0xff]  ;;  %v2270_v11 = vcombine.low %v292_v62, %v296_v63  ;;  %v2027_v13 = vcombine.high %v46_v6, %v50_v7  ;;  %v2026_v21 = vcombine.low %v46_v6, %v50_v7 }
  0x8a   :  { %v2029_v14 = vcombine.high %v47_v8, %v51_v9  ;;  %v2028_v22 = vcombine.low %v47_v8, %v51_v9  ;;  %v110_v9 = vld [vmem:[#allocation5 + $0x210] sm:$0xff] }
  0x8c   :  { %1660 = vmatpush1.bf16.msra.mxu0 %v2214_v16  ;;  %1746 = vmatpush1.bf16.msra.mxu1 %v2216_v17  ;;  %v58_v16 = vld [vmem:[#allocation5 + $0x70] sm:$0xff]  ;;  %v2456_v17 = vld [vmem:[#allocation2 + $0x8] ss:$16 sps:$4 sm:$0xff]  }
  0x8d   :  { %1661 = vmatprep.subr.bf16.mxu0 %v2223_v18  ;;  %1747 = vmatprep.subr.bf16.mxu1 %v2225_v20  ;;  %v55_v18 = vld [vmem:[#allocation5 + $0x58] sm:$0xff]  ;;  %v2035_v23 = vcombine.high %v54_v15, %v58_v16  ;;  %v2034_v29 = vcombine.low %v54_v15, %v58_v16 }
  0x8e   :  { %v59_v20 = vld [vmem:[#allocation5 + $0x78] sm:$0xff] }
  0x8f   :  { %v2037_v24 = vcombine.high %v55_v18, %v59_v20  ;;  %v2036_v30 = vcombine.low %v55_v18, %v59_v20  ;;  %v118_v20 = vld [vmem:[#allocation5 + $0x250] sm:$0xff] }
  0x90   :  { %1662 = vmatpush1.bf16.msra.mxu0 %v2222_v25  ;;  %1748 = vmatpush1.bf16.msra.mxu1 %v2224_v26  ;;  %v62_v25 = vld [vmem:[#allocation5 + $0x90] sm:$0xff] }
  0x91   :  { %1663 = vmatprep.subr.bf16.mxu0 %v2231_v27  ;;  %1749 = vmatprep.subr.bf16.mxu1 %v2233_v28  ;;  %v66_v26 = vld [vmem:[#allocation5 + $0xb0] sm:$0xff]  ;;  %v63_v27 = vld [vmem:[#allocation5 + $0x98] sm:$0xff] }
  0x92   :  { %v67_v28 = vld [vmem:[#allocation5 + $0xb8] sm:$0xff]  ;;  %v2043_v31 = vcombine.high %v62_v25, %v66_v26  ;;  %v2042_v37 = vcombine.low %v62_v25, %v66_v26 }
  0x93   :  { %v2045_v32 = vcombine.high %v63_v27, %v67_v28  ;;  %v2044_v38 = vcombine.low %v63_v27, %v67_v28  ;;  %v126_v28 = vld [vmem:[#allocation5 + $0x290] sm:$0xff] }
  0x94   :  { %1664 = vmatpush1.bf16.msra.mxu0 %v2230_v33  ;;  %1750 = vmatpush1.bf16.msra.mxu1 %v2232_v34  ;;  %v70_v33 = vld [vmem:[#allocation5 + $0xd0] sm:$0xff] }
  0x95   :  { %1665 = vmatprep.subr.bf16.mxu0 %v2239_v35  ;;  %1751 = vmatprep.subr.bf16.mxu1 %v2241_v36  ;;  %v74_v34 = vld [vmem:[#allocation5 + $0xf0] sm:$0xff]  ;;  %v71_v35 = vld [vmem:[#allocation5 + $0xd8] sm:$0xff] }
  0x96   :  { %v75_v36 = vld [vmem:[#allocation5 + $0xf8] sm:$0xff]  ;;  %v2051_v39 = vcombine.high %v70_v33, %v74_v34  ;;  %v2050_v45 = vcombine.low %v70_v33, %v74_v34 }
  0x97   :  { %v2053_v40 = vcombine.high %v71_v35, %v75_v36  ;;  %v2052_v46 = vcombine.low %v71_v35, %v75_v36  ;;  %v134_v36 = vld [vmem:[#allocation5 + $0x2d0] sm:$0xff] }
  0x98   :  { %1666 = vmatpush1.bf16.msra.mxu0 %v2238_v41  ;;  %1752 = vmatpush1.bf16.msra.mxu1 %v2240_v42  ;;  %v78_v41 = vld [vmem:[#allocation5 + $0x110] sm:$0xff] }
  0x99   :  { %1667 = vmatprep.subr.bf16.mxu0 %v2247_v43  ;;  %1753 = vmatprep.subr.bf16.mxu1 %v2249_v44  ;;  %v82_v42 = vld [vmem:[#allocation5 + $0x130] sm:$0xff]  ;;  %v79_v43 = vld [vmem:[#allocation5 + $0x118] sm:$0xff] }
  0x9a   :  { %v83_v44 = vld [vmem:[#allocation5 + $0x138] sm:$0xff]  ;;  %v2059_v47 = vcombine.high %v78_v41, %v82_v42 }
  0x9b   :  { %v2060_v53 = vcombine.low %v79_v43, %v83_v44 }
  0x9c   :  { %1668 = vmatpush1.bf16.msra.mxu0 %v2246_v49  ;;  %1754 = vmatpush1.bf16.msra.mxu1 %v2248_v50  ;;  %v90_v49 = vld [vmem:[#allocation5 + $0x170] sm:$0xff]  ;;  %v87_v50 = vld [vmem:[#allocation5 + $0x158] sm:$0xff] }
  0x9d   :  { %1669 = vmatprep.subr.bf16.mxu0 %v2255_v51  ;;  %1755 = vmatprep.subr.bf16.mxu1 %v2257_v52  ;;  %v91_v51 = vld [vmem:[#allocation5 + $0x178] sm:$0xff]  ;;  %v2058_v52 = vcombine.low %v78_v41, %v82_v42  ;;  %v2067_v54 = vcombine.high %v86_v48, %v90_v49 }
  0x9e   :  { %v2069_v55 = vcombine.high %v87_v50, %v91_v51  ;;  %v2068_v62 = vcombine.low %v87_v50, %v91_v51  ;;  %v150_v51 = vld [vmem:[#allocation5 + $0x350] sm:$0xff] }
  0xa0   :  { %1670 = vmatpush1.bf16.msra.mxu0 %v2254_v58  ;;  %1756 = vmatpush1.bf16.msra.mxu1 %v2256_v59  ;;  %v98_v58 = vld [vmem:[#allocation5 + $0x1b0] sm:$0xff]  ;;  %v95_v59 = vld [vmem:[#allocation5 + $0x198] sm:$0xff] }
  0xa1   :  { %1671 = vmatprep.subr.bf16.mxu0 %v2263_v60  ;;  %1757 = vmatprep.subr.bf16.mxu1 %v2265_v61  ;;  %v99_v60 = vld [vmem:[#allocation5 + $0x1b8] sm:$0xff]  ;;  %v2066_v61 = vcombine.low %v86_v48, %v90_v49  ;;  %v2075_v63 = vcombine.high %v94_v57, %v98_v58 }
  0xa2   :  { %v2077_v0 = vcombine.high %v95_v59, %v99_v60  ;;  %v2076_v6 = vcombine.low %v95_v59, %v99_v60  ;;  %v158_v60 = vld [vmem:[#allocation5 + $0x390] sm:$0xff] }
  0xa4   :  { %1672 = vmatpush1.bf16.msra.mxu0 %v2262_v2  ;;  %1758 = vmatpush1.bf16.msra.mxu1 %v2264_v3  ;;  %v106_v2 = vld [vmem:[#allocation5 + $0x1f0] sm:$0xff]  ;;  %v103_v3 = vld [vmem:[#allocation5 + $0x1d8] sm:$0xff] }
  0xa5   :  { %1673 = vmatprep.subr.bf16.mxu0 %v2271_v4  ;;  %1759 = vmatprep.subr.bf16.mxu1 %v2273_v5  ;;  %v107_v4 = vld [vmem:[#allocation5 + $0x1f8] sm:$0xff]  ;;  %v2074_v5 = vcombine.low %v94_v57, %v98_v58  ;;  %v2083_v7 = vcombine.high %v102_v1, %v106_v2 }
  0xa6   :  { %v2085_v8 = vcombine.high %v103_v3, %v107_v4  ;;  %v2084_v15 = vcombine.low %v103_v3, %v107_v4  ;;  %v166_v4 = vld [vmem:[#allocation5 + $0x3d0] sm:$0xff] }
  0xa8   :  { %1674 = vmatpush1.bf16.msra.mxu0 %v2270_v11  ;;  %1760 = vmatpush1.bf16.msra.mxu1 %v2272_v12  ;;  %v114_v11 = vld [vmem:[#allocation5 + $0x230] sm:$0xff]  ;;  %v111_v12 = vld [vmem:[#allocation5 + $0x218] sm:$0xff] }
  0xa9   :  { %1772 = vmatprep.subr.bf16.mxu0 %v2027_v13  ;;  %1858 = vmatprep.subr.bf16.mxu1 %v2029_v14  ;;  %v115_v13 = vld [vmem:[#allocation5 + $0x238] sm:$0xff]  ;;  %v2082_v14 = vcombine.low %v102_v1, %v106_v2  ;;  %v2091_v16 = vcombine.high %v110_v9, %v114_v11 }
  0xaa   :  { %v2093_v18 = vcombine.high %v111_v12, %v115_v13  ;;  %v2092_v25 = vcombine.low %v111_v12, %v115_v13  ;;  %v174_v13 = vld [vmem:[#allocation5 + $0x410] sm:$0xff] }
  0xab   :  { %1676 = vmatmul.mubr.bf16.vlgmr.msra.gmra.mrb[0].mxu0 %v2456_v17  ;;  %1762 = vmatmul.mubr.bf16.vlgmr.msra.gmra.mrb[0].mxu1 %v2456_v17 }
  0xac   :  { %1773 = vmatpush1.bf16.msra.mxu0 %v2026_v21  ;;  %1859 = vmatpush1.bf16.msra.mxu1 %v2028_v22  ;;  %v122_v21 = vld [vmem:[#allocation5 + $0x270] sm:$0xff]  ;;  %v119_v22 = vld [vmem:[#allocation5 + $0x258] sm:$0xff] }
  0xad   :  { %1774 = vmatprep.subr.bf16.mxu0 %v2035_v23  ;;  %1860 = vmatprep.subr.bf16.mxu1 %v2037_v24  ;;  %v123_v23 = vld [vmem:[#allocation5 + $0x278] sm:$0xff]  ;;  %v2090_v24 = vcombine.low %v110_v9, %v114_v11  ;;  %v2099_v26 = vcombine.high %v118_v20, %v122_v21 }
  0xae   :  { %1804 = vmatprep.mubr.bf16.mxu0 %v2444_v56  ;;  %1890 = vmatprep.mubr.bf16.mxu1 %v2444_v56  ;;  %v2061_v56 = vcombine.high %v79_v43, %v83_v44  ;;  %v2101_v27 = vcombine.high %v119_v22, %v123_v23  ;;  %v2100_v33 = vcombine.low %v119_v22, %v123_v23  ;;  %v142_v44 = vld [vmem:[#allocation5 + $0x310] sm:$0xff] }
  0xaf   :  { %v182_v23 = vld [vmem:[#allocation5 + $0x450] sm:$0xff] }
  0xb0   :  { %1775 = vmatpush1.bf16.msra.mxu0 %v2034_v29  ;;  %1861 = vmatpush1.bf16.msra.mxu1 %v2036_v30  ;;  %v130_v29 = vld [vmem:[#allocation5 + $0x2b0] sm:$0xff]  ;;  %v127_v30 = vld [vmem:[#allocation5 + $0x298] sm:$0xff] }
  0xb1   :  { %1776 = vmatprep.subr.bf16.mxu0 %v2043_v31  ;;  %1862 = vmatprep.subr.bf16.mxu1 %v2045_v32  ;;  %v131_v31 = vld [vmem:[#allocation5 + $0x2b8] sm:$0xff]  ;;  %v2098_v32 = vcombine.low %v118_v20, %v122_v21  ;;  %v2107_v34 = vcombine.high %v126_v28, %v130_v29 }
  0xb2   :  { %v2109_v35 = vcombine.high %v127_v30, %v131_v31  ;;  %v2108_v41 = vcombine.low %v127_v30, %v131_v31  ;;  %v190_v31 = vld [vmem:[#allocation5 + $0x490] sm:$0xff] }
  0xb4   :  { %1777 = vmatpush1.bf16.msra.mxu0 %v2042_v37  ;;  %1863 = vmatpush1.bf16.msra.mxu1 %v2044_v38  ;;  %v138_v37 = vld [vmem:[#allocation5 + $0x2f0] sm:$0xff]  ;;  %v135_v38 = vld [vmem:[#allocation5 + $0x2d8] sm:$0xff] }
  0xb5   :  { %1778 = vmatprep.subr.bf16.mxu0 %v2051_v39  ;;  %1864 = vmatprep.subr.bf16.mxu1 %v2053_v40  ;;  %v139_v39 = vld [vmem:[#allocation5 + $0x2f8] sm:$0xff]  ;;  %v2106_v40 = vcombine.low %v126_v28, %v130_v29  ;;  %v2115_v42 = vcombine.high %v134_v36, %v138_v37 }
  0xb6   :  { %v2117_v43 = vcombine.high %v135_v38, %v139_v39  ;;  %v2116_v48 = vcombine.low %v135_v38, %v139_v39  ;;  %v198_v39 = vld [vmem:[#allocation5 + $0x4d0] sm:$0xff] }
  0xb8   :  { %1779 = vmatpush1.bf16.msra.mxu0 %v2050_v45  ;;  %1865 = vmatpush1.bf16.msra.mxu1 %v2052_v46  ;;  %v146_v45 = vld [vmem:[#allocation5 + $0x330] sm:$0xff]  ;;  %v143_v46 = vld [vmem:[#allocation5 + $0x318] sm:$0xff] }
  0xb9   :  { %1780 = vmatprep.subr.bf16.mxu0 %v2059_v47  ;;  %1866 = vmatprep.subr.bf16.mxu1 %v2061_v56  ;;  %v147_v47 = vld [vmem:[#allocation5 + $0x338] sm:$0xff]  ;;  %v2114_v56 = vcombine.low %v134_v36, %v138_v37  ;;  %v2123_v49 = vcombine.high %v142_v44, %v146_v45 }
  0xba   :  { %v2125_v50 = vcombine.high %v143_v46, %v147_v47  ;;  %v2124_v57 = vcombine.low %v143_v46, %v147_v47  ;;  %v206_v46 = vld [vmem:[#allocation5 + $0x510] sm:$0xff] }
  0xbb   :  { %v210_v47 = vld [vmem:[#allocation5 + $0x530] sm:$0xff] }
  0xbc   :  { %1781 = vmatpush1.bf16.msra.mxu0 %v2058_v52  ;;  %1867 = vmatpush1.bf16.msra.mxu1 %v2060_v53  ;;  %v154_v52 = vld [vmem:[#allocation5 + $0x370] sm:$0xff]  ;;  %v151_v53 = vld [vmem:[#allocation5 + $0x358] sm:$0xff] }
  0xbd   :  { %1782 = vmatprep.subr.bf16.mxu0 %v2067_v54  ;;  %1868 = vmatprep.subr.bf16.mxu1 %v2069_v55  ;;  %v155_v54 = vld [vmem:[#allocation5 + $0x378] sm:$0xff]  ;;  %v2122_v55 = vcombine.low %v142_v44, %v146_v45  ;;  %v2131_v58 = vcombine.high %v150_v51, %v154_v52 }
  0xbe   :  { %v2133_v59 = vcombine.high %v151_v53, %v155_v54  ;;  %v2132_v1 = vcombine.low %v151_v53, %v155_v54  ;;  %v218_v53 = vld [vmem:[#allocation5 + $0x570] sm:$0xff]  ;;  %v215_v54 = vld [vmem:[#allocation5 + $0x558] sm:$0xff] }
  0xc0   :  { %1783 = vmatpush1.bf16.msra.mxu0 %v2066_v61  ;;  %1869 = vmatpush1.bf16.msra.mxu1 %v2068_v62  ;;  %v162_v61 = vld [vmem:[#allocation5 + $0x3b0] sm:$0xff]  ;;  %v159_v62 = vld [vmem:[#allocation5 + $0x398] sm:$0xff] }
  0xc1   :  { %1784 = vmatprep.subr.bf16.mxu0 %v2075_v63  ;;  %1870 = vmatprep.subr.bf16.mxu1 %v2077_v0  ;;  %v163_v63 = vld [vmem:[#allocation5 + $0x3b8] sm:$0xff]  ;;  %v2130_v0 = vcombine.low %v150_v51, %v154_v52  ;;  %v2139_v2 = vcombine.high %v158_v60, %v162_v61  ;;  %v2187_v51 = vcombine.high %v206_v46, %v210_v47  ;;  %v214_v52 = vld [vmem:[#allocation5 + $0x550] sm:$0xff] }
  0xc2   :  { %v2141_v3 = vcombine.high %v159_v62, %v163_v63  ;;  %v2140_v9 = vcombine.low %v159_v62, %v163_v63  ;;  %v226_v62 = vld [vmem:[#allocation5 + $0x5b0] sm:$0xff]  ;;  %v223_v63 = vld [vmem:[#allocation5 + $0x598] sm:$0xff] }
  0xc4   :  { %1785 = vmatpush1.bf16.msra.mxu0 %v2074_v5  ;;  %1871 = vmatpush1.bf16.msra.mxu1 %v2076_v6  ;;  %v170_v5 = vld [vmem:[#allocation5 + $0x3f0] sm:$0xff]  ;;  %v167_v6 = vld [vmem:[#allocation5 + $0x3d8] sm:$0xff] }
  0xc5   :  { %1786 = vmatprep.subr.bf16.mxu0 %v2083_v7  ;;  %1872 = vmatprep.subr.bf16.mxu1 %v2085_v8  ;;  %v171_v7 = vld [vmem:[#allocation5 + $0x3f8] sm:$0xff]  ;;  %v2138_v8 = vcombine.low %v158_v60, %v162_v61  ;;  %v2147_v11 = vcombine.high %v166_v4, %v170_v5  ;;  %v222_v61 = vld [vmem:[#allocation5 + $0x590] sm:$0xff] }
  0xc6   :  { %v2149_v12 = vcombine.high %v167_v6, %v171_v7  ;;  %v2148_v20 = vcombine.low %v167_v6, %v171_v7  ;;  %v234_v6 = vld [vmem:[#allocation5 + $0x5f0] sm:$0xff]  ;;  %v231_v7 = vld [vmem:[#allocation5 + $0x5d8] sm:$0xff] }
  0xc8   :  { %1787 = vmatpush1.bf16.msra.mxu0 %v2082_v14  ;;  %1873 = vmatpush1.bf16.msra.mxu1 %v2084_v15  ;;  %v178_v14 = vld [vmem:[#allocation5 + $0x430] sm:$0xff]  ;;  %v175_v15 = vld [vmem:[#allocation5 + $0x418] sm:$0xff] }
  0xc9   :  { %1788 = vmatprep.subr.bf16.mxu0 %v2091_v16  ;;  %1874 = vmatprep.subr.bf16.mxu1 %v2093_v18  ;;  %v179_v16 = vld [vmem:[#allocation5 + $0x438] sm:$0xff]  ;;  %v2146_v18 = vcombine.low %v166_v4, %v170_v5  ;;  %v2155_v21 = vcombine.high %v174_v13, %v178_v14  ;;  %v230_v5 = vld [vmem:[#allocation5 + $0x5d0] sm:$0xff] }
  0xca   :  { %v2157_v22 = vcombine.high %v175_v15, %v179_v16  ;;  %v2156_v28 = vcombine.low %v175_v15, %v179_v16  ;;  %v242_v15 = vld [vmem:[#allocation5 + $0x630] sm:$0xff]  ;;  %v239_v16 = vld [vmem:[#allocation5 + $0x618] sm:$0xff] }
  0xcc   :  { %1789 = vmatpush1.bf16.msra.mxu0 %v2090_v24  ;;  %1875 = vmatpush1.bf16.msra.mxu1 %v2092_v25  ;;  %v186_v24 = vld [vmem:[#allocation5 + $0x470] sm:$0xff]  ;;  %v183_v25 = vld [vmem:[#allocation5 + $0x458] sm:$0xff] }
  0xcd   :  { %1790 = vmatprep.subr.bf16.mxu0 %v2099_v26  ;;  %1876 = vmatprep.subr.bf16.mxu1 %v2101_v27  ;;  %v187_v26 = vld [vmem:[#allocation5 + $0x478] sm:$0xff]  ;;  %v2154_v27 = vcombine.low %v174_v13, %v178_v14  ;;  %v2163_v29 = vcombine.high %v182_v23, %v186_v24  ;;  %v238_v14 = vld [vmem:[#allocation5 + $0x610] sm:$0xff] }
  0xce   :  { %v2165_v30 = vcombine.high %v183_v25, %v187_v26  ;;  %v2164_v36 = vcombine.low %v183_v25, %v187_v26  ;;  %v250_v25 = vld [vmem:[#allocation5 + $0x670] sm:$0xff]  ;;  %v247_v26 = vld [vmem:[#allocation5 + $0x658] sm:$0xff] }
  0xd0   :  { %1791 = vmatpush1.bf16.msra.mxu0 %v2098_v32  ;;  %1877 = vmatpush1.bf16.msra.mxu1 %v2100_v33  ;;  %v194_v32 = vld [vmem:[#allocation5 + $0x4b0] sm:$0xff]  ;;  %v191_v33 = vld [vmem:[#allocation5 + $0x498] sm:$0xff] }
  0xd1   :  { %1792 = vmatprep.subr.bf16.mxu0 %v2107_v34  ;;  %1878 = vmatprep.subr.bf16.mxu1 %v2109_v35  ;;  %v195_v34 = vld [vmem:[#allocation5 + $0x4b8] sm:$0xff]  ;;  %v2162_v35 = vcombine.low %v182_v23, %v186_v24  ;;  %v2171_v37 = vcombine.high %v190_v31, %v194_v32  ;;  %v246_v24 = vld [vmem:[#allocation5 + $0x650] sm:$0xff] }
  0xd2   :  { %v2173_v38 = vcombine.high %v191_v33, %v195_v34 }
  0xd4   :  { %1793 = vmatpush1.bf16.msra.mxu0 %v2106_v40  ;;  %1879 = vmatpush1.bf16.msra.mxu1 %v2108_v41  ;;  %v202_v40 = vld [vmem:[#allocation5 + $0x4f0] sm:$0xff]  ;;  %v199_v41 = vld [vmem:[#allocation5 + $0x4d8] sm:$0xff] }
  0xd5   :  { %1794 = vmatprep.subr.bf16.mxu0 %v2115_v42  ;;  %1880 = vmatprep.subr.bf16.mxu1 %v2117_v43  ;;  %v203_v42 = vld [vmem:[#allocation5 + $0x4f8] sm:$0xff]  ;;  %v2170_v43 = vcombine.low %v190_v31, %v194_v32  ;;  %v2179_v44 = vcombine.high %v198_v39, %v202_v40  ;;  %v254_v32 = vld [vmem:[#allocation5 + $0x690] sm:$0xff] }
  0xd6   :  { %v2181_v45 = vcombine.high %v199_v41, %v203_v42 }
  0xd8   :  { %1795 = vmatpush1.bf16.msra.mxu0 %v2114_v56  ;;  %1881 = vmatpush1.bf16.msra.mxu1 %v2116_v48  ;;  %v207_v56 = vld [vmem:[#allocation5 + $0x518] sm:$0xff] }
  0xd9   :  { %1796 = vmatprep.subr.bf16.mxu0 %v2123_v49  ;;  %1882 = vmatprep.subr.bf16.mxu1 %v2125_v50  ;;  %v211_v48 = vld [vmem:[#allocation5 + $0x538] sm:$0xff]  ;;  %v2178_v49 = vcombine.low %v198_v39, %v202_v40  ;;  %v2180_v50 = vcombine.low %v199_v41, %v203_v42  ;;  %v262_v40 = vld [vmem:[#allocation5 + $0x6d0] sm:$0xff] }
  0xda   :  { %v266_v41 = vld [vmem:[#allocation5 + $0x6f0] sm:$0xff]  ;;  %v263_v42 = vld [vmem:[#allocation5 + $0x6d8] sm:$0xff] }
  0xdc   :  { %1797 = vmatpush1.bf16.msra.mxu0 %v2122_v55  ;;  %1883 = vmatpush1.bf16.msra.mxu1 %v2124_v57  ;;  %v219_v55 = vld [vmem:[#allocation5 + $0x578] sm:$0xff]  ;;  %v2186_v57 = vcombine.low %v206_v46, %v210_v47  ;;  %v270_v47 = vld [vmem:[#allocation5 + $0x710] sm:$0xff] }
  0xdd   :  { %1798 = vmatprep.subr.bf16.mxu0 %v2131_v58  ;;  %1884 = vmatprep.subr.bf16.mxu1 %v2133_v59  ;;  %v2188_v58 = vcombine.low %v207_v56, %v211_v48  ;;  %v2195_v59 = vcombine.high %v214_v52, %v218_v53  ;;  %v2197_v60 = vcombine.high %v215_v54, %v219_v55 }
  0xe0   :  { %1799 = vmatpush1.bf16.msra.mxu0 %v2130_v0  ;;  %1885 = vmatpush1.bf16.msra.mxu1 %v2132_v1  ;;  %v227_v0 = vld [vmem:[#allocation5 + $0x5b8] sm:$0xff]  ;;  %v2194_v1 = vcombine.low %v214_v52, %v218_v53  ;;  %v278_v53 = vld [vmem:[#allocation5 + $0x750] sm:$0xff] }
  0xe1   :  { %1800 = vmatprep.subr.bf16.mxu0 %v2139_v2  ;;  %1886 = vmatprep.subr.bf16.mxu1 %v2141_v3  ;;  %v2196_v2 = vcombine.low %v215_v54, %v219_v55  ;;  %v2203_v3 = vcombine.high %v222_v61, %v226_v62  ;;  %v2205_v4 = vcombine.high %v223_v63, %v227_v0  ;;  %v282_v54 = vld [vmem:[#allocation5 + $0x770] sm:$0xff]  ;;  %v279_v55 = vld [vmem:[#allocation5 + $0x758] sm:$0xff] }
  0xe4   :  { %1801 = vmatpush1.bf16.msra.mxu0 %v2138_v8  ;;  %1887 = vmatpush1.bf16.msra.mxu1 %v2140_v9  ;;  %v235_v8 = vld [vmem:[#allocation5 + $0x5f8] sm:$0xff]  ;;  %v2202_v9 = vcombine.low %v222_v61, %v226_v62  ;;  %v286_v62 = vld [vmem:[#allocation5 + $0x790] sm:$0xff] }
  0xe5   :  { %1802 = vmatprep.subr.bf16.mxu0 %v2147_v11  ;;  %1888 = vmatprep.subr.bf16.mxu1 %v2149_v12  ;;  %v2204_v11 = vcombine.low %v223_v63, %v227_v0  ;;  %v2211_v12 = vcombine.high %v230_v5, %v234_v6  ;;  %v2213_v13 = vcombine.high %v231_v7, %v235_v8  ;;  %v290_v63 = vld [vmem:[#allocation5 + $0x7b0] sm:$0xff]  ;;  %v287_v0 = vld [vmem:[#allocation5 + $0x798] sm:$0xff] }
  0xe8   :  { %1803 = vmatpush1.bf16.msra.mxu0 %v2146_v18  ;;  %1889 = vmatpush1.bf16.msra.mxu1 %v2148_v20  ;;  %v243_v18 = vld [vmem:[#allocation5 + $0x638] sm:$0xff]  ;;  %v2210_v20 = vcombine.low %v230_v5, %v234_v6  ;;  %v294_v6 = vld [vmem:[#allocation5 + $0x7d0] sm:$0xff] }
  0xe9   :  { %1815 = vmatprep.subr.bf16.mxu0 %v2155_v21  ;;  %1901 = vmatprep.subr.bf16.mxu1 %v2157_v22  ;;  %v2212_v21 = vcombine.low %v231_v7, %v235_v8  ;;  %v2219_v22 = vcombine.high %v238_v14, %v242_v15  ;;  %v2221_v23 = vcombine.high %v239_v16, %v243_v18  ;;  %v298_v7 = vld [vmem:[#allocation5 + $0x7f0] sm:$0xff]  ;;  %v295_v8 = vld [vmem:[#allocation5 + $0x7d8] sm:$0xff] }
  0xeb   :  { %1805 = vmatmul.mubr.bf16.vlgmr.msra.gmra.mrb[4].mxu0 %v2448_v10  ;;  %1891 = vmatmul.mubr.bf16.vlgmr.msra.gmra.mrb[4].mxu1 %v2448_v10  ;;  %v2172_v10 = vcombine.low %v191_v33, %v195_v34  ;;  %v258_v33 = vld [vmem:[#allocation5 + $0x6b0] sm:$0xff]  ;;  %v255_v34 = vld [vmem:[#allocation5 + $0x698] sm:$0xff] }
  0xec   :  { %1816 = vmatpush1.bf16.msra.mxu0 %v2154_v27  ;;  %1902 = vmatpush1.bf16.msra.mxu1 %v2156_v28  ;;  %v251_v27 = vld [vmem:[#allocation5 + $0x678] sm:$0xff]  ;;  %v2218_v28 = vcombine.low %v238_v14, %v242_v15  ;;  %v2274_v15 = vcombine.low %v294_v6, %v298_v7 }
  0xed   :  { %1817 = vmatprep.subr.bf16.mxu0 %v2163_v29  ;;  %1903 = vmatprep.subr.bf16.mxu1 %v2165_v30  ;;  %v2220_v29 = vcombine.low %v239_v16, %v243_v18  ;;  %v2227_v30 = vcombine.high %v246_v24, %v250_v25  ;;  %v2229_v31 = vcombine.high %v247_v26, %v251_v27 }
  0xee   :  { %1847 = vmatprep.mubr.bf16.mxu0 %v2450_v19  ;;  %1933 = vmatprep.mubr.bf16.mxu1 %v2450_v19  ;;  %v2189_v19 = vcombine.high %v207_v56, %v211_v48  ;;  %v274_v56 = vld [vmem:[#allocation5 + $0x730] sm:$0xff]  ;;  %v271_v48 = vld [vmem:[#allocation5 + $0x718] sm:$0xff] }
  0xf0   :  { %1818 = vmatpush1.bf16.msra.mxu0 %v2162_v35  ;;  %1904 = vmatpush1.bf16.msra.mxu1 %v2164_v36  ;;  %v259_v35 = vld [vmem:[#allocation5 + $0x6b8] sm:$0xff]  ;;  %v2226_v36 = vcombine.low %v246_v24, %v250_v25 }
  0xf1   :  { %1819 = vmatprep.subr.bf16.mxu0 %v2171_v37  ;;  %1905 = vmatprep.subr.bf16.mxu1 %v2173_v38  ;;  %v2228_v37 = vcombine.low %v247_v26, %v251_v27  ;;  %v2235_v38 = vcombine.high %v254_v32, %v258_v33  ;;  %v2237_v39 = vcombine.high %v255_v34, %v259_v35 }
  0xf4   :  { %1820 = vmatpush1.bf16.msra.mxu0 %v2170_v43  ;;  %1906 = vmatpush1.bf16.msra.mxu1 %v2172_v10  ;;  %v267_v43 = vld [vmem:[#allocation5 + $0x6f8] sm:$0xff]  ;;  %v2234_v10 = vcombine.low %v254_v32, %v258_v33 }
  0xf5   :  { %1821 = vmatprep.subr.bf16.mxu0 %v2179_v44  ;;  %1907 = vmatprep.subr.bf16.mxu1 %v2181_v45  ;;  %v2236_v44 = vcombine.low %v255_v34, %v259_v35  ;;  %v2243_v45 = vcombine.high %v262_v40, %v266_v41  ;;  %v2245_v46 = vcombine.high %v263_v42, %v267_v43 }
  0xf8   :  { %1822 = vmatpush1.bf16.msra.mxu0 %v2178_v49  ;;  %1908 = vmatpush1.bf16.msra.mxu1 %v2180_v50  ;;  %v275_v49 = vld [vmem:[#allocation5 + $0x738] sm:$0xff]  ;;  %v2242_v50 = vcombine.low %v262_v40, %v266_v41 }
  0xf9   :  { %1823 = vmatprep.subr.bf16.mxu0 %v2187_v51  ;;  %1909 = vmatprep.subr.bf16.mxu1 %v2189_v19  ;;  %v2244_v51 = vcombine.low %v263_v42, %v267_v43  ;;  %v2251_v19 = vcombine.high %v270_v47, %v274_v56  ;;  %v2253_v52 = vcombine.high %v271_v48, %v275_v49 }
  0xfc   :  { %1824 = vmatpush1.bf16.msra.mxu0 %v2186_v57  ;;  %1910 = vmatpush1.bf16.msra.mxu1 %v2188_v58  ;;  %v283_v57 = vld [vmem:[#allocation5 + $0x778] sm:$0xff]  ;;  %v2250_v58 = vcombine.low %v270_v47, %v274_v56 }
  0xfd   :  { %1825 = vmatprep.subr.bf16.mxu0 %v2195_v59  ;;  %1911 = vmatprep.subr.bf16.mxu1 %v2197_v60  ;;  %v2252_v59 = vcombine.low %v271_v48, %v275_v49  ;;  %v2259_v60 = vcombine.high %v278_v53, %v282_v54  ;;  %v2261_v61 = vcombine.high %v279_v55, %v283_v57 }
 0x100   :  { %1826 = vmatpush1.bf16.msra.mxu0 %v2194_v1  ;;  %1912 = vmatpush1.bf16.msra.mxu1 %v2196_v2  ;;  %v291_v1 = vld [vmem:[#allocation5 + $0x7b8] sm:$0xff]  ;;  %v2258_v2 = vcombine.low %v278_v53, %v282_v54 }
 0x101   :  { %1827 = vmatprep.subr.bf16.mxu0 %v2203_v3  ;;  %1913 = vmatprep.subr.bf16.mxu1 %v2205_v4  ;;  %v2260_v3 = vcombine.low %v279_v55, %v283_v57  ;;  %v2267_v4 = vcombine.high %v286_v62, %v290_v63  ;;  %v2269_v5 = vcombine.high %v287_v0, %v291_v1 }
 0x104   :  { %1828 = vmatpush1.bf16.msra.mxu0 %v2202_v9  ;;  %1914 = vmatpush1.bf16.msra.mxu1 %v2204_v11  ;;  %v299_v9 = vld [vmem:[#allocation5 + $0x7f8] sm:$0xff]  ;;  %v2266_v11 = vcombine.low %v286_v62, %v290_v63 }
 0x105   :  { %1829 = vmatprep.subr.bf16.mxu0 %v2211_v12  ;;  %1915 = vmatprep.subr.bf16.mxu1 %v2213_v13  ;;  %v2268_v12 = vcombine.low %v287_v0, %v291_v1  ;;  %v2275_v13 = vcombine.high %v294_v6, %v298_v7  ;;  %v2277_v14 = vcombine.high %v295_v8, %v299_v9 }
 0x106   :  { %v2276_v16 = vcombine.low %v295_v8, %v299_v9 }
 0x108   :  { %1830 = vmatpush1.bf16.msra.mxu0 %v2210_v20  ;;  %1916 = vmatpush1.bf16.msra.mxu1 %v2212_v21 }
 0x109   :  { %1831 = vmatprep.subr.bf16.mxu0 %v2219_v22  ;;  %1917 = vmatprep.subr.bf16.mxu1 %v2221_v23 }
 0x10c   :  { %1832 = vmatpush1.bf16.msra.mxu0 %v2218_v28  ;;  %1918 = vmatpush1.bf16.msra.mxu1 %v2220_v29 }
 0x10d   :  { %1833 = vmatprep.subr.bf16.mxu0 %v2227_v30  ;;  %1919 = vmatprep.subr.bf16.mxu1 %v2229_v31 }
 0x110   :  { %1834 = vmatpush1.bf16.msra.mxu0 %v2226_v36  ;;  %1920 = vmatpush1.bf16.msra.mxu1 %v2228_v37 }
 0x111   :  { %1835 = vmatprep.subr.bf16.mxu0 %v2235_v38  ;;  %1921 = vmatprep.subr.bf16.mxu1 %v2237_v39 }
 0x114   :  { %1836 = vmatpush1.bf16.msra.mxu0 %v2234_v10  ;;  %1922 = vmatpush1.bf16.msra.mxu1 %v2236_v44 }
 0x115   :  { %1837 = vmatprep.subr.bf16.mxu0 %v2243_v45  ;;  %1923 = vmatprep.subr.bf16.mxu1 %v2245_v46 }
 0x118   :  { %1838 = vmatpush1.bf16.msra.mxu0 %v2242_v50  ;;  %1924 = vmatpush1.bf16.msra.mxu1 %v2244_v51 }
 0x119   :  { %1839 = vmatprep.subr.bf16.mxu0 %v2251_v19  ;;  %1925 = vmatprep.subr.bf16.mxu1 %v2253_v52 }
 0x11c   :  { %1840 = vmatpush1.bf16.msra.mxu0 %v2250_v58  ;;  %1926 = vmatpush1.bf16.msra.mxu1 %v2252_v59 }
 0x11d   :  { %1841 = vmatprep.subr.bf16.mxu0 %v2259_v60  ;;  %1927 = vmatprep.subr.bf16.mxu1 %v2261_v61 }
 0x120   :  { %1842 = vmatpush1.bf16.msra.mxu0 %v2258_v2  ;;  %1928 = vmatpush1.bf16.msra.mxu1 %v2260_v3 }
 0x121   :  { %1843 = vmatprep.subr.bf16.mxu0 %v2267_v4  ;;  %1929 = vmatprep.subr.bf16.mxu1 %v2269_v5 }
 0x124   :  { %1844 = vmatpush1.bf16.msra.mxu0 %v2266_v11  ;;  %1930 = vmatpush1.bf16.msra.mxu1 %v2268_v12 }
 0x125   :  { %1845 = vmatprep.subr.bf16.mxu0 %v2275_v13  ;;  %1931 = vmatprep.subr.bf16.mxu1 %v2277_v14 }
 0x128   :  { %1846 = vmatpush1.bf16.msra.mxu0 %v2274_v15  ;;  %1932 = vmatpush1.bf16.msra.mxu1 %v2276_v16 }
 0x12b   :  { %1848 = vmatmul.mubr.bf16.vlgmr.msra.gmra.mrb[4].mxu0 %v2456_v17  ;;  %1934 = vmatmul.mubr.bf16.vlgmr.msra.gmra.mrb[4].mxu1 %v2456_v17 }
 0x17e   :  { %v1677_v18 = vpop.f32.mrb[0].mxu0  ;;  %v1763_v20 = vpop.f32.mrb[0].mxu1 }
 0x17f   :  { %v1679_v21 = vpop.f32.mrb[1].mxu0  ;;  %v1765_v23 = vpop.f32.mrb[1].mxu1 }
 0x180   :  { %v2286_v22 = vpack.c.bf16 %v1679_v21, %v1677_v18  ;;  %v1681_v24 = vpop.f32.mrb[2].mxu0  ;;  %v2287_v25 = vpack.c.bf16 %v1765_v23, %v1763_v20  ;;  %v1767_v26 = vpop.f32.mrb[2].mxu1 }
 0x181   :  { %v1683_v27 = vpop.f32.mrb[3].mxu0  ;;  %v1769_v29 = vpop.f32.mrb[3].mxu1 }
 0x182   :  { %1992 = vst [vmem:[#allocation7] sm:$0xff] %v2286_v22  ;;  %v2290_v28 = vpack.c.bf16 %v1683_v27, %v1681_v24  ;;  %1993 = vst [vmem:[#allocation7 + $0x8] sm:$0xff] %v2287_v25  ;;  %v2291_v30 = vpack.c.bf16 %v1769_v29, %v1767_v26 }
 0x184   :  { %1996 = vst [vmem:[#allocation7 + $0x20] sm:$0xff] %v2290_v28  ;;  %1997 = vst [vmem:[#allocation7 + $0x28] sm:$0xff] %v2291_v30 }
 0x1fe   :  { %v1849_v31 = vpop.f32.mrb[4].mxu0  ;;  %v1935_v32 = vpop.f32.mrb[4].mxu1 }
 0x1ff   :  { %v1851_v33 = vpop.f32.mrb[5].mxu0  ;;  %v1937_v34 = vpop.f32.mrb[5].mxu1 }
 0x200   :  { %v2288_v17 = vpack.c.bf16 %v1851_v33, %v1849_v31  ;;  %v1853_v35 = vpop.f32.mrb[6].mxu0  ;;  %v2289_v36 = vpack.c.bf16 %v1937_v34, %v1935_v32  ;;  %v1939_v37 = vpop.f32.mrb[6].mxu1 }
 0x201   :  { %v1855_v38 = vpop.f32.mrb[7].mxu0  ;;  %v1941_v40 = vpop.f32.mrb[7].mxu1 }
 0x202   :  { %1994 = vst [vmem:[#allocation7 + $0x10] sm:$0xff] %v2288_v17  ;;  %v2292_v39 = vpack.c.bf16 %v1855_v38, %v1853_v35  ;;  %1995 = vst [vmem:[#allocation7 + $0x18] sm:$0xff] %v2289_v36  ;;  %v2293_v41 = vpack.c.bf16 %v1941_v40, %v1939_v37 }
 0x204   :  { %1998 = vst [vmem:[#allocation7 + $0x30] sm:$0xff] %v2292_v39  ;;  %1999 = vst [vmem:[#allocation7 + $0x38] sm:$0xff] %v2293_v41 }
 0x205   :  { %2378 = shalt.err (!%p2375_p6)
}
 0x206   :  { %s2379_s12 = scalar_lea.hbm %s2485_s2, 1024 }
 0x207   :  { %p2380_p7 = scmp.ne.s32.totalorder %s2485_s2, %s2379_s12  ;;  %p2383_p8 = scmp.lt.u32.totalorder %s2379_s12, %s2485_s2 }
 0x209   :  { %p2385_p9 = pnand %p2383_p8, %p2380_p7 }
 0x20b   :  { %2388 = shalt.err (!%p2385_p9)
}
 0x20c   :  { %2011 = dma.vmem_to_hbm [thread:$0]  %s2006_s8, 1024, %s2485_s2, [#allocation4], %s2399_s0, %s2399_s0, %s2400_s5  }
 0x20d   :  { %2393 = dma.done.wait [#allocation4], 1024  }
 0x20e   :  { %2394 = vsyncadd [#allocation4], 4294966272 }
 0x20f   :  { %2015 = vsyncpa [#allocation3], 1 }
 0x210   :  { %2016 = vsyncpa [#allocation6], 1 }
 0x211   :  { %2017 = vsyncpa [#allocation4], 1 }

</bundles_post_ra>
